<compile_context>
chip_gen: v7x
topology: tpu7x:2x2x1
jax: 0.10.0
libtpu: 0.0.40
codegen_flags: <defaults>
</compile_context>

<pallas_src>
import functools

import jax
import jax.numpy as jnp
import numpy as np
from jax import lax
from jax.experimental import pallas as pl
from jax.experimental.pallas import tpu as pltpu


# --------------------------- hardware-aware sizing ---------------------------

_TPU_VMEM_CAP = None


def _vmem_cap():
    global _TPU_VMEM_CAP
    if _TPU_VMEM_CAP is None:
        cap = 64 * 1024 * 1024                       # conservative default (v7x)
        try:
            cap = int(getattr(pltpu.get_tpu_info(), "vmem_capacity_bytes", cap))
        except Exception:
            pass
        _TPU_VMEM_CAP = cap
    return _TPU_VMEM_CAP


def _vmem_limit():
    # ~3/4 of physical VMEM: ~48 MiB on v7x (64 MiB), ~96 MiB on v5e/v6e (128 MiB).
    return int(min(_vmem_cap() * 3 // 4, 112 * 1024 * 1024))


def _round_up(a, b):
    return ((a + b - 1) // b) * b


def _tile_plan(n_flat, s_max, relu_mult=4):
    """Returns (halo, conv_tile, elementwise_tile).

    halo: >= largest tap shift, multiple of 128.
    conv_tile: multiple of halo; target 1024 (v7x) / 2048 (v5e/v6e) lanes.
    elementwise_tile: multiple of conv_tile, up to relu_mult x bigger (amortizes
    the ~0.35us per-grid-step overhead on the mem-bound passes)."""
    halo = max(128, _round_up(s_max, 128))
    target = 1024 if _vmem_cap() <= 96 * 1024 * 1024 else 2048
    conv_tile = _round_up(max(halo, min(target, _round_up(n_flat, halo))), halo)
    relu_tile = min(relu_mult * conv_tile, _round_up(n_flat, conv_tile))
    return halo, conv_tile, relu_tile


# ------------------------------ Pallas kernels -------------------------------

def _make_conv_kernel(shifts, tile, n_inputs, has_bias, compute_stats, cout,
                      cout_chunk):
    """Tap-folded conv kernel.

    refs (inputs):  [x0_main (Cin0,TILE), x0_halo (Cin0,HALO)] * n_inputs,
                    [w_k (Cout, KH*KW*Cin_k)] * n_inputs,
                    [bias (Cout,1) f32]?, [mask (1,TILE) f32]?
    refs (outputs): out (Cout,TILE) bf16, [stats (Cout,2) f32, revisited]?
    """

    def kernel(*refs):
        x_main = [refs[2 * k] for k in range(n_inputs)]
        x_halo = [refs[2 * k + 1] for k in range(n_inputs)]
        w_refs = refs[2 * n_inputs:3 * n_inputs]
        pos = 3 * n_inputs
        bias_ref = refs[pos] if has_bias else None
        pos += int(has_bias)
        mask_ref = refs[pos] if compute_stats else None
        pos += int(compute_stats)
        o_ref = refs[pos]
        stats_ref = refs[pos + 1] if compute_stats else None

        if compute_stats:
            @pl.when(pl.program_id(0) == 0)
            def _init():
                stats_ref[...] = jnp.zeros_like(stats_ref)

            mask = mask_ref[...].astype(jnp.float32)          # (1, TILE), {0,1}

        # Tap-stacked operands (KH*KW*Cin_k, TILE), built ONCE per input; each
        # conv then reduces to a single MXU contraction per Cout chunk.
        stacked = []
        for k in range(n_inputs):
            x_cat = jnp.concatenate([x_main[k][...], x_halo[k][...]], axis=-1)
            stacked.append(
                jnp.concatenate([x_cat[:, s:s + tile] for s in shifts], axis=0))

        # Chunk Cout so the f32 accumulator stays within the vreg budget at
        # real channel counts (Cout*TILE*4B per chunk).
        for c0 in range(0, cout, cout_chunk):
            cs = min(cout_chunk, cout - c0)
            acc = jnp.zeros((cs, tile), jnp.float32)
            if has_bias:
                acc = acc + bias_ref[pl.ds(c0, cs), :]
            for k in range(n_inputs):
                acc = acc + jnp.dot(w_refs[k][pl.ds(c0, cs), :], stacked[k],
                                    preferred_element_type=jnp.float32)
            o_ref[pl.ds(c0, cs), :] = acc.astype(o_ref.dtype)
            if compute_stats:
                am = acc * mask                                # zero garbage lanes
                part = jnp.concatenate(
                    [jnp.sum(am, axis=1, keepdims=True),
                     jnp.sum(am * acc, axis=1, keepdims=True)], axis=1)
                stats_ref[pl.ds(c0, cs), :] = stats_ref[pl.ds(c0, cs), :] + part

    return kernel


def _relu_repack_kernel(x_halo_ref, x_ref, s_ref, t_ref, mask_ref, o_ref, *,
                        halo, shift_lanes, tile):
    # out[q] = mask[q] * relu(x[q - shift_lanes] * scale + shift)
    # i.e. BN+ReLU written directly in the next conv's padded-flat layout.
    x_cat = jnp.concatenate([x_halo_ref[...], x_ref[...]], axis=-1)
    x = x_cat[:, halo - shift_lanes:halo - shift_lanes + tile].astype(jnp.float32)
    y = jnp.maximum(x * s_ref[...] + t_ref[...], 0.0)
    o_ref[...] = (y * mask_ref[...]).astype(o_ref.dtype)


def _scale_shift_relu_kernel(x_ref, s_ref, t_ref, o_ref):
    x = x_ref[...].astype(jnp.float32)
    o_ref[...] = jnp.maximum(x * s_ref[...] + t_ref[...], 0.0).astype(o_ref.dtype)


# ------------------------------ conv wrapper ---------------------------------

def conv2d_flat(xs_flat, ws, bias, *, Wp, tile, out_len, min_halo=128,
                valid_mask=None):
    """sum_k conv2d(xs_flat[k], ws[k], stride=1) on a padded-flat layout.

    xs_flat[k]: (Cin_k, in_len) bf16, padded-flat (row width Wp); in_len must be
                a multiple of `tile` and >= out_len + halo.
    ws[k]:      (Cout, Cin_k, KH, KW).
    out_len:    multiple of `tile`; output is (Cout, out_len) bf16 in the SAME
                flat layout, valid where h < Hp-KH+1 and w < Wp-KW+1.
    valid_mask: optional (1, out_len) f32 0/1 mask of valid output lanes; if
                given, also returns fused per-channel (sum, sum(x^2)) BN stats.
    """
    Cout, _, KH, KW = ws[0].shape
    shifts = [i * Wp + j for i in range(KH) for j in range(KW)]
    halo = max(128, _round_up(max(shifts[-1], min_halo), 128))
    assert tile % halo == 0 and out_len % tile == 0
    nb = out_len // tile
    compute_stats = valid_mask is not None
    has_bias = bias is not None

    args, in_specs = [], []
    for x in xs_flat:
        ci = x.shape[0]
        assert x.shape[1] % tile == 0 and x.shape[1] >= out_len + halo
        args += [x, x]
        in_specs += [
            pl.BlockSpec((ci, tile), lambda i: (0, i)),                        # current
            pl.BlockSpec((ci, halo),                                           # narrow halo
                         lambda i, r=tile // halo: (0, (i + 1) * r)),
        ]
    for x, w in zip(xs_flat, ws):
        assert w.shape[0] == Cout and w.shape[1] == x.shape[0]
        assert w.shape[2:] == (KH, KW)
        wf = jnp.transpose(w, (0, 2, 3, 1)).reshape(Cout, KH * KW * w.shape[1])
        args.append(wf.astype(jnp.bfloat16))
        in_specs.append(pl.BlockSpec(wf.shape, lambda i: (0, 0)))              # VMEM resident
    if has_bias:
        args.append(bias.reshape(Cout, 1).astype(jnp.float32))
        in_specs.append(pl.BlockSpec((Cout, 1), lambda i: (0, 0)))
    if compute_stats:
        args.append(valid_mask)
        in_specs.append(pl.BlockSpec((1, tile), lambda i: (0, i)))

    out_shape = jax.ShapeDtypeStruct((Cout, out_len), jnp.bfloat16)
    out_spec = pl.BlockSpec((Cout, tile), lambda i: (0, i))
    if compute_stats:
        out_shape = (out_shape, jax.ShapeDtypeStruct((Cout, 2), jnp.float32))
        out_spec = (out_spec, pl.BlockSpec((Cout, 2), lambda i: (0, 0)))

    kernel = _make_conv_kernel(shifts, tile, len(xs_flat), has_bias,
                               compute_stats, Cout, min(Cout, 256))
    result = pl.pallas_call(
        kernel,
        out_shape=out_shape,
        grid=(nb,),
        in_specs=in_specs,
        out_specs=out_spec,
        compiler_params=pltpu.CompilerParams(
            # Fused BN stats revisit their output block every step -> 'arbitrary';
            # otherwise pixel tiles are independent -> 'parallel' (megacore).
            dimension_semantics=("arbitrary",) if compute_stats else ("parallel",),
            vmem_limit_bytes=_vmem_limit()),
    )(*args)
    if compute_stats:
        return result[0], result[1]
    return result, None


# ------------------------- BatchNorm (training) + ReLU -----------------------

def _bn_scale_shift(stats, gamma, beta, count, eps=1e-5):
    # Training-mode BN: biased batch statistics over the valid N*H*W lanes.
    mean = stats[:, 0] / count
    var = jnp.maximum(stats[:, 1] / count - mean * mean, 0.0)
    inv = lax.rsqrt(var + eps)
    scale = (gamma * inv).astype(jnp.float32).reshape(-1, 1)
    shift = (beta - mean * gamma * inv).astype(jnp.float32).reshape(-1, 1)
    return scale, shift


def bn_relu_repack(x_flat, stats, gamma, beta, count, *, shift_lanes, halo,
                   tile, target_mask, eps=1e-5):
    """relu(BN(x)) written directly in the NEXT conv's padded-flat layout
    (constant lane shift `shift_lanes`); zeros at that layout's padding."""
    C, L = x_flat.shape
    assert L % tile == 0 and tile % halo == 0 and halo >= shift_lanes
    scale, shift = _bn_scale_shift(stats, gamma, beta, count, eps)
    r = tile // halo
    kernel = functools.partial(_relu_repack_kernel, halo=halo,
                               shift_lanes=shift_lanes, tile=tile)
    # NOTE: with toy channel counts (C < 8) sublane utilization is low here;
    # at real channel counts the (C, tile) blocks are dense in both dims.
    return pl.pallas_call(
        kernel,
        out_shape=jax.ShapeDtypeStruct((C, L), jnp.bfloat16),
        grid=(L // tile,),
        in_specs=[
            pl.BlockSpec((C, halo),                                     # low-side halo
                         lambda i, r=r: (0, jnp.maximum(i * r - 1, 0))),
            pl.BlockSpec((C, tile), lambda i: (0, i)),
            pl.BlockSpec((C, 1), lambda i: (0, 0)),
            pl.BlockSpec((C, 1), lambda i: (0, 0)),
            pl.BlockSpec((1, tile), lambda i: (0, i)),
        ],
        out_specs=pl.BlockSpec((C, tile), lambda i: (0, i)),
        compiler_params=pltpu.CompilerParams(
            dimension_semantics=("parallel",), vmem_limit_bytes=_vmem_limit()),
    )(x_flat, x_flat, scale, shift, target_mask)


def bn_relu(x_flat, stats, gamma, beta, count, *, tile, eps=1e-5,
            out_dtype=jnp.float32):
    """Plain fused scale/shift/ReLU (lane-dense, large tiles)."""
    C, L = x_flat.shape
    assert L % tile == 0
    scale, shift = _bn_scale_shift(stats, gamma, beta, count, eps)
    return pl.pallas_call(
        _scale_shift_relu_kernel,
        out_shape=jax.ShapeDtypeStruct((C, L), out_dtype),
        grid=(L // tile,),
        in_specs=[pl.BlockSpec((C, tile), lambda i: (0, i)),
                  pl.BlockSpec((C, 1), lambda i: (0, 0)),
                  pl.BlockSpec((C, 1), lambda i: (0, 0))],
        out_specs=pl.BlockSpec((C, tile), lambda i: (0, i)),
        compiler_params=pltpu.CompilerParams(
            dimension_semantics=("parallel",), vmem_limit_bytes=_vmem_limit()),
    )(x_flat, scale, shift)


# ------------------------------ layout helpers -------------------------------

def _pad_flatten(x_cnhw, pad, flat_len):
    C, N, H, W = x_cnhw.shape
    Hp, Wp = H + 2 * pad, W + 2 * pad
    xp = jnp.pad(x_cnhw, ((0, 0), (0, 0), (pad, pad), (pad, pad)))
    xf = xp.reshape(C, N * Hp * Wp)
    return jnp.pad(xf, ((0, 0), (0, flat_len - N * Hp * Wp))).astype(jnp.bfloat16)


def _conv_valid_mask(N, Hp, Wp, Ho, Wo, out_len):
    # 1 where the flat position is a real conv output (h < Ho, w < Wo, in-range).
    p = jnp.arange(out_len)
    w = p % Wp
    h = (p // Wp) % Hp
    valid = (p < N * Hp * Wp) & (w < Wo) & (h < Ho)
    return valid.astype(jnp.float32).reshape(1, out_len)


def _repad_target_mask(N, Hp, Wp, pad, Hv, Wv, out_len):
    # 1 where the flat position of the NEXT conv's padded layout receives data.
    q = jnp.arange(out_len)
    w = q % Wp
    h = (q // Wp) % Hp
    valid = ((q < N * Hp * Wp) & (w >= pad) & (w < pad + Wv)
             & (h >= pad) & (h < pad + Hv))
    return valid.astype(jnp.float32).reshape(1, out_len)


# ------------------------------ JAX glue (tiny) -------------------------------

def _bilinear_matrix(n_in, n_out):
    # nn.Upsample(scale_factor=2, mode='bilinear', align_corners=True)
    if n_in == 1:
        return jnp.ones((n_out, 1), jnp.float32)
    src = jnp.arange(n_out, dtype=jnp.float32) * (n_in - 1) / (n_out - 1)
    lo = jnp.clip(jnp.floor(src).astype(jnp.int32), 0, n_in - 2)
    frac = src - lo.astype(jnp.float32)
    rows = jnp.arange(n_out)
    mat = jnp.zeros((n_out, n_in), jnp.float32)
    mat = mat.at[rows, lo].add(1.0 - frac)
    mat = mat.at[rows, lo + 1].add(frac)
    return mat


def upsample_bilinear_x2_cnhw(x):
    C, N, H, W = x.shape
    mh = _bilinear_matrix(H, 2 * H)
    mw = _bilinear_matrix(W, 2 * W)
    return jnp.einsum("ah,bw,cnhw->cnab", mh, mw, x)


def _crop_cnhw(image, h_out, w_out):
    # matches PatchGan's crop(): center crop with start = mid//2 - new//2
    sh = image.shape[2] // 2 - h_out // 2
    sw = image.shape[3] // 2 - w_out // 2
    return image[:, :, sh:sh + h_out, sw:sw + w_out]


# --------------------------- ExpandingBlock forward --------------------------

def expanding_block_forward(params, x_nchw, skip_nchw):
    """ExpandingBlock forward (use_bn=True, use_dropout=False, use_att=False).

    conv2/conv3 biases are omitted: a per-channel constant added right before
    training-mode BatchNorm is exactly cancelled by the batch-mean subtraction.
    (NOT valid for eval-mode running statistics.)
    """
    x = jnp.transpose(x_nchw, (1, 0, 2, 3)).astype(jnp.float32)      # (C,N,H,W)
    skip = jnp.transpose(skip_nchw, (1, 0, 2, 3)).astype(jnp.float32)

    # ---- Upsample x2 (align_corners) — two tiny separable XLA matmuls --------
    # TODO(synk): could be folded into conv1 as a fractionally-strided conv to
    # avoid materializing the 4x activation in HBM.
    x = upsample_bilinear_x2_cnhw(x)
    C_half = params["w1"].shape[0]
    N = x.shape[1]

    # ---- conv1 (k=2, no pad, bias, no BN) ------------------------------------
    Hp1, Wp1 = x.shape[2], x.shape[3]
    n_flat1 = N * Hp1 * Wp1
    _, T1, _ = _tile_plan(n_flat1, Wp1 + 1)
    L1 = _round_up(n_flat1, T1)
    xf1 = _pad_flatten(x, 0, L1 + T1)
    out1, _ = conv2d_flat([xf1], [params["w1"]], params["b1"],
                          Wp=Wp1, tile=T1, out_len=L1)
    H1, W1 = Hp1 - 1, Wp1 - 1
    x1 = out1[:, :n_flat1].reshape(C_half, N, Hp1, Wp1)[:, :, :H1, :W1]

    # ---- crop skip connection to conv1's spatial size ------------------------
    skip_c = _crop_cnhw(skip, H1, W1)

    # ---- conv2 (k=3, pad=1) on cat([x1, skip]) + fused BN stats --------------
    # The channel concat is never materialized: the weight is split and the two
    # partial convs are summed inside the kernel.
    Hp2, Wp2 = H1 + 2, W1 + 2
    n_flat2 = N * Hp2 * Wp2
    halo2, T2, Tr2 = _tile_plan(n_flat2, 2 * Wp2 + 2)
    Ho2, Wo2 = Hp2 - 2, Wp2 - 2              # conv2 valid output extent
    Ho3, Wo3 = Hp2 - 1, Wp2 - 1              # conv3 valid output extent
    L3 = _round_up(n_flat2, Tr2)                                 # conv3 out len
    L2 = _round_up(max(_round_up(n_flat2, T2), L3 + halo2), Tr2)  # grid-2 len
    w2 = params["w2"]
    xf_a = _pad_flatten(x1, 1, L2 + T2)
    xf_b = _pad_flatten(skip_c, 1, L2 + T2)
    mask2 = _conv_valid_mask(N, Hp2, Wp2, Ho2, Wo2, L2)
    out2, stats2 = conv2d_flat([xf_a, xf_b], [w2[:, :C_half], w2[:, C_half:]],
                               None, Wp=Wp2, tile=T2, out_len=L2,
                               min_halo=halo2, valid_mask=mask2)

    # ---- BN + ReLU written directly into conv3's padded-flat layout ----------
    # (conv2's 17x17-per-image flat grid IS conv3's padded-input grid, offset by
    #  a constant Wp2+1 lanes — so no XLA crop/reshape/pad between the stages.)
    tmask2 = _repad_target_mask(N, Hp2, Wp2, 1, Ho2, Wo2, L2)
    y2 = bn_relu_repack(out2, stats2, params["gamma"], params["beta"],
                        count=N * Ho2 * Wo2, shift_lanes=Wp2 + 1, halo=halo2,
                        tile=Tr2, target_mask=tmask2)

    # ---- conv3 (k=2, pad=1) + fused BN stats (input already padded-flat) -----
    mask3 = _conv_valid_mask(N, Hp2, Wp2, Ho3, Wo3, L3)
    out3, stats3 = conv2d_flat([y2], [params["w3"]], None,
                               Wp=Wp2, tile=T2, out_len=L3,
                               min_halo=halo2, valid_mask=mask3)

    # ---- final BN + ReLU ------------------------------------------------------
    y3 = bn_relu(out3, stats3, params["gamma"], params["beta"],
                 count=N * Ho3 * Wo3, tile=Tr2)

    # TODO(synk): CBAM attention (use_att=True) references a class not defined
    # in the provided source; this implements use_att=False, use_dropout=False.
    out = y3[:, :n_flat2].reshape(C_half, N, Hp2, Wp2)[:, :, :Ho3, :Wo3]
    return jnp.transpose(out, (1, 0, 2, 3))                      # back to NCHW


# ------------------------------- reference -----------------------------------

def _reference_forward(params, x_nchw, skip_nchw):
    """Pure-JAX f32 reference (training-mode BatchNorm; att/dropout off)."""
    def conv(x, w, b, pad):
        y = lax.conv_general_dilated(
            x, w, window_strides=(1, 1), padding=[(pad, pad), (pad, pad)],
            dimension_numbers=("NCHW", "OIHW", "NCHW"))
        return y + b.reshape(1, -1, 1, 1) if b is not None else y

    def bn_relu_ref(x, g, b, eps=1e-5):
        mean = x.mean(axis=(0, 2, 3), keepdims=True)
        var = x.var(axis=(0, 2, 3), keepdims=True)               # biased
        xn = (x - mean) * lax.rsqrt(var + eps)
        return jnp.maximum(xn * g.reshape(1, -1, 1, 1) + b.reshape(1, -1, 1, 1),
                           0.0)

    x = x_nchw.astype(jnp.float32)
    _, _, H, W = x.shape
    mh, mw = _bilinear_matrix(H, 2 * H), _bilinear_matrix(W, 2 * W)
    x = jnp.einsum("ah,bw,nchw->ncab", mh, mw, x)
    x = conv(x, params["w1"], params["b1"], 0)
    sh = skip_nchw.shape[2] // 2 - x.shape[2] // 2
    sw = skip_nchw.shape[3] // 2 - x.shape[3] // 2
    skip_c = skip_nchw[:, :, sh:sh + x.shape[2], sw:sw + x.shape[3]]
    x = conv(jnp.concatenate([x, skip_c.astype(jnp.float32)], axis=1),
             params["w2"], params["b2"], 1)
    x = bn_relu_ref(x, params["gamma"], params["beta"])
    x = conv(x, params["w3"], params["b3"], 1)
    x = bn_relu_ref(x, params["gamma"], params["beta"])
    return x


# ----------------------------------- main -------------------------------------

if __name__ == "__main__":
    key = jax.random.PRNGKey(0)
    C = 4  # input_channels
    k1, k2, k3, k4, k5, k6, k7, k8, kx, ks = jax.random.split(key, 10)
    params = {
        "w1": 0.1 * jax.random.normal(k1, (C // 2, C, 2, 2), jnp.float32),
        "b1": 0.1 * jax.random.normal(k2, (C // 2,), jnp.float32),
        "w2": 0.1 * jax.random.normal(k3, (C // 2, C, 3, 3), jnp.float32),
        # b2 / b3 exist in the PyTorch module but are exactly cancelled by the
        # training-mode BatchNorm mean subtraction, so the kernels skip them.
        "b2": 0.1 * jax.random.normal(k4, (C // 2,), jnp.float32),
        "w3": 0.1 * jax.random.normal(k5, (C // 2, C // 2, 2, 2), jnp.float32),
        "b3": 0.1 * jax.random.normal(k6, (C // 2,), jnp.float32),
        "gamma": 1.0 + 0.1 * jax.random.normal(k7, (C // 2,), jnp.float32),
        "beta": 0.1 * jax.random.normal(k8, (C // 2,), jnp.float32),
    }

    x = jax.random.normal(kx, (2, C, 8, 8), jnp.float32)              # NCHW input
    skip_con_x = jax.random.normal(ks, (2, C // 2, 18, 18), jnp.float32)

    out = jax.jit(expanding_block_forward)(params, x, skip_con_x)
    jax.block_until_ready(out)

    # 8 -> upsample 16 -> conv1(k2) 15 -> conv2(k3,p1) 15 -> conv3(k2,p1) 16
    assert out.shape == (2, C // 2, 16, 16), out.shape

    # Loose-tolerance check vs. a pure-JAX f32 reference (kernels run bf16).
    ref = _reference_forward(params, x, skip_con_x)
    np.testing.assert_allclose(np.asarray(out), np.asarray(ref),
                               rtol=0.1, atol=0.1)

    print("KERNEL_OK")
</pallas_src>

<mosaic_0001>
module attributes {stable_mosaic.version = 11 : i64} {
  func.func private @main(%arg0: i32) attributes {dimension_semantics = [#tpu.dimension_semantics<core_parallel>], iteration_bounds = array<i64: 2>, tpu.core_type = #tpu.core_type<sc_scalar_subcore>, window_params = []} {
    return
  }
}

module attributes {stable_mosaic.version = 11 : i64} {
  func.func private @main(%arg0: i32) attributes {dimension_semantics = [#tpu.dimension_semantics<core_parallel>], iteration_bounds = array<i64: 2>, tpu.core_type = #tpu.core_type<sc_scalar_subcore>, window_params = []} {
    return
  }
}

module attributes {stable_mosaic.version = 11 : i64} {
  func.func @kernel(%arg0: i32, %arg1: memref<4x512xbf16, #tpu.memory_space<vmem>>, %arg2: memref<4x128xbf16, #tpu.memory_space<vmem>>, %arg3: memref<2x16xbf16, #tpu.memory_space<vmem>>, %arg4: memref<2x1xf32, #tpu.memory_space<vmem>>, %arg5: memref<2x512xbf16, #tpu.memory_space<vmem>>) attributes {dimension_semantics = [#tpu.dimension_semantics<parallel>], iteration_bounds = array<i64: 1>, scalar_prefetch = 0 : i64, scratch_operands = 0 : i64, tpu.core_type = #tpu.core_type<tc>, window_params = [{transform_indices = @transform_0, window_bounds = array<i64: 4, 512>}, {transform_indices = @transform_1, window_bounds = array<i64: 4, 128>}, {pipeline_mode = #tpu.pipeline_mode<synchronous>, transform_indices = @transform_2, window_bounds = array<i64: 2, 16>}, {pipeline_mode = #tpu.pipeline_mode<synchronous>, transform_indices = @transform_3, window_bounds = array<i64: 2, 1>}, {transform_indices = @transform_4, window_bounds = array<i64: 2, 512>}]} {
    %c0 = arith.constant 0 : index
    %c0_0 = arith.constant 0 : index
    %0 = vector.load %arg1[%c0, %c0_0] : memref<4x512xbf16, #tpu.memory_space<vmem>>, vector<4x512xbf16>
    %c0_1 = arith.constant 0 : index
    %c0_2 = arith.constant 0 : index
    %1 = vector.load %arg2[%c0_1, %c0_2] : memref<4x128xbf16, #tpu.memory_space<vmem>>, vector<4x128xbf16>
    %2 = tpu.concatenate %0, %1 in 1 : vector<4x512xbf16>, vector<4x128xbf16> -> vector<4x640xbf16>
    %3 = vector.extract_strided_slice %2 {offsets = [0, 0], sizes = [4, 512], strides = [1, 1]} : vector<4x640xbf16> to vector<4x512xbf16>
    %4 = vector.extract_strided_slice %2 {offsets = [0, 1], sizes = [4, 512], strides = [1, 1]} : vector<4x640xbf16> to vector<4x512xbf16>
    %5 = vector.extract_strided_slice %2 {offsets = [0, 16], sizes = [4, 512], strides = [1, 1]} : vector<4x640xbf16> to vector<4x512xbf16>
    %6 = vector.extract_strided_slice %2 {offsets = [0, 17], sizes = [4, 512], strides = [1, 1]} : vector<4x640xbf16> to vector<4x512xbf16>
    %7 = tpu.concatenate %3, %4, %5, %6 in 0 : vector<4x512xbf16>, vector<4x512xbf16>, vector<4x512xbf16>, vector<4x512xbf16> -> vector<16x512xbf16>
    %cst = arith.constant 0.000000e+00 : f32
    %8 = vector.broadcast %cst : f32 to vector<2x512xf32>
    %c0_3 = arith.constant 0 : index
    %c0_4 = arith.constant 0 : index
    %9 = vector.load %arg4[%c0_3, %c0_4] : memref<2x1xf32, #tpu.memory_space<vmem>>, vector<2x1xf32>
    %10 = vector.broadcast %9 : vector<2x1xf32> to vector<2x512xf32>
    %11 = arith.addf %8, %10 : vector<2x512xf32>
    %c0_5 = arith.constant 0 : index
    %c0_6 = arith.constant 0 : index
    %12 = vector.load %arg3[%c0_5, %c0_6] : memref<2x16xbf16, #tpu.memory_space<vmem>>, vector<2x16xbf16>
    %cst_7 = arith.constant dense<0.000000e+00> : vector<2x512xf32>
    %13 = tpu.matmul %12, %7, %cst_7 {dimension_numbers = #tpu.dot_dimension_numbers<[1], [0], [0], [1], [0, 0, 1, 1], [], []>} : vector<2x16xbf16>, vector<16x512xbf16>, vector<2x512xf32> -> vector<2x512xf32>
    %14 = arith.addf %11, %13 : vector<2x512xf32>
    %15 = arith.truncf %14 : vector<2x512xf32> to vector<2x512xbf16>
    %c0_8 = arith.constant 0 : index
    %c0_9 = arith.constant 0 : index
    %16 = vector.load %arg5[%c0_8, %c0_9] : memref<2x512xbf16, #tpu.memory_space<vmem>>, vector<2x512xbf16>
    tpu.vector_store %arg5[%c0_8, %c0_9], %15 {strides = array<i32>} : memref<2x512xbf16, #tpu.memory_space<vmem>>, vector<2x512xbf16>,
    return
  }
  func.func @transform_0(%arg0: i32) -> (i32, i32) {
    %c0_i32 = arith.constant 0 : i32
    %c0_i32_0 = arith.constant 0 : i32
    return %c0_i32, %arg0 : i32, i32
  }
  func.func @transform_1(%arg0: i32) -> (i32, i32) {
    %c1_i32 = arith.constant 1 : i32
    %0 = arith.addi %arg0, %c1_i32 : i32
    %c4_i32 = arith.constant 4 : i32
    %1 = arith.muli %0, %c4_i32 : i32
    %c0_i32 = arith.constant 0 : i32
    %c0_i32_0 = arith.constant 0 : i32
    return %c0_i32, %1 : i32, i32
  }
  func.func @transform_2(%arg0: i32) -> (i32, i32) {
    %c0_i32 = arith.constant 0 : i32
    %c0_i32_0 = arith.constant 0 : i32
    %c0_i32_1 = arith.constant 0 : i32
    return %c0_i32, %c0_i32_0 : i32, i32
  }
  func.func @transform_3(%arg0: i32) -> (i32, i32) {
    %c0_i32 = arith.constant 0 : i32
    %c0_i32_0 = arith.constant 0 : i32
    %c0_i32_1 = arith.constant 0 : i32
    return %c0_i32, %c0_i32_0 : i32, i32
  }
  func.func @transform_4(%arg0: i32) -> (i32, i32) {
    %c0_i32 = arith.constant 0 : i32
    %c0_i32_0 = arith.constant 0 : i32
    return %c0_i32, %arg0 : i32, i32
  }
}

module attributes {stable_mosaic.version = 11 : i64} {
  func.func @kernel(%arg0: i32, %arg1: memref<2x640xbf16, #tpu.memory_space<vmem>>, %arg2: memref<2x128xbf16, #tpu.memory_space<vmem>>, %arg3: memref<2x640xbf16, #tpu.memory_space<vmem>>, %arg4: memref<2x128xbf16, #tpu.memory_space<vmem>>, %arg5: memref<2x18xbf16, #tpu.memory_space<vmem>>, %arg6: memref<2x18xbf16, #tpu.memory_space<vmem>>, %arg7: memref<1x640xf32, #tpu.memory_space<vmem>>, %arg8: memref<2x640xbf16, #tpu.memory_space<vmem>>, %arg9: memref<2x2xf32, #tpu.memory_space<vmem>>) attributes {dimension_semantics = [#tpu.dimension_semantics<arbitrary>], iteration_bounds = array<i64: 2>, scalar_prefetch = 0 : i64, scratch_operands = 0 : i64, tpu.core_type = #tpu.core_type<tc>, window_params = [{transform_indices = @transform_0, window_bounds = array<i64: 2, 640>}, {transform_indices = @transform_1, window_bounds = array<i64: 2, 128>}, {transform_indices = @transform_2, window_bounds = array<i64: 2, 640>}, {transform_indices = @transform_3, window_bounds = array<i64: 2, 128>}, {pipeline_mode = #tpu.pipeline_mode<synchronous>, transform_indices = @transform_4, window_bounds = array<i64: 2, 18>}, {pipeline_mode = #tpu.pipeline_mode<synchronous>, transform_indices = @transform_5, window_bounds = array<i64: 2, 18>}, {transform_indices = @transform_6, window_bounds = array<i64: 1, 640>}, {transform_indices = @transform_7, window_bounds = array<i64: 2, 640>}, {pipeline_mode = #tpu.pipeline_mode<synchronous>, transform_indices = @transform_8, window_bounds = array<i64: 2, 2>}]} {
    %c0_i32 = arith.constant 0 : i32
    %0 = arith.cmpi eq, %arg0, %c0_i32 : i32
    %1 = arith.extui %0 : i1 to i32
    %c0_i32_0 = arith.constant 0 : i32
    %2 = arith.cmpi ne, %1, %c0_i32_0 : i32
    scf.if %2 {
      %cst_24 = arith.constant 0.000000e+00 : f32
      %50 = vector.broadcast %cst_24 : f32 to vector<2x2xf32>
      %c0_25 = arith.constant 0 : index
      %c0_26 = arith.constant 0 : index
      %51 = vector.load %arg9[%c0_25, %c0_26] : memref<2x2xf32, #tpu.memory_space<vmem>>, vector<2x2xf32>
      tpu.vector_store %arg9[%c0_25, %c0_26], %50 {strides = array<i32>} : memref<2x2xf32, #tpu.memory_space<vmem>>, vector<2x2xf32>,
    } else {
    }
    %c0 = arith.constant 0 : index
    %c0_1 = arith.constant 0 : index
    %3 = vector.load %arg7[%c0, %c0_1] : memref<1x640xf32, #tpu.memory_space<vmem>>, vector<1x640xf32>
    %c0_2 = arith.constant 0 : index
    %c0_3 = arith.constant 0 : index
    %4 = vector.load %arg1[%c0_2, %c0_3] : memref<2x640xbf16, #tpu.memory_space<vmem>>, vector<2x640xbf16>
    %c0_4 = arith.constant 0 : index
    %c0_5 = arith.constant 0 : index
    %5 = vector.load %arg2[%c0_4, %c0_5] : memref<2x128xbf16, #tpu.memory_space<vmem>>, vector<2x128xbf16>
    %6 = tpu.concatenate %4, %5 in 1 : vector<2x640xbf16>, vector<2x128xbf16> -> vector<2x768xbf16>
    %7 = vector.extract_strided_slice %6 {offsets = [0, 0], sizes = [2, 640], strides = [1, 1]} : vector<2x768xbf16> to vector<2x640xbf16>
    %8 = vector.extract_strided_slice %6 {offsets = [0, 1], sizes = [2, 640], strides = [1, 1]} : vector<2x768xbf16> to vector<2x640xbf16>
    %9 = vector.extract_strided_slice %6 {offsets = [0, 2], sizes = [2, 640], strides = [1, 1]} : vector<2x768xbf16> to vector<2x640xbf16>
    %10 = vector.extract_strided_slice %6 {offsets = [0, 17], sizes = [2, 640], strides = [1, 1]} : vector<2x768xbf16> to vector<2x640xbf16>
    %11 = vector.extract_strided_slice %6 {offsets = [0, 18], sizes = [2, 640], strides = [1, 1]} : vector<2x768xbf16> to vector<2x640xbf16>
    %12 = vector.extract_strided_slice %6 {offsets = [0, 19], sizes = [2, 640], strides = [1, 1]} : vector<2x768xbf16> to vector<2x640xbf16>
    %13 = vector.extract_strided_slice %6 {offsets = [0, 34], sizes = [2, 640], strides = [1, 1]} : vector<2x768xbf16> to vector<2x640xbf16>
    %14 = vector.extract_strided_slice %6 {offsets = [0, 35], sizes = [2, 640], strides = [1, 1]} : vector<2x768xbf16> to vector<2x640xbf16>
    %15 = vector.extract_strided_slice %6 {offsets = [0, 36], sizes = [2, 640], strides = [1, 1]} : vector<2x768xbf16> to vector<2x640xbf16>
    %16 = tpu.concatenate %7, %8, %9, %10, %11, %12, %13, %14, %15 in 0 : vector<2x640xbf16>, vector<2x640xbf16>, vector<2x640xbf16>, vector<2x640xbf16>, vector<2x640xbf16>, vector<2x640xbf16>, vector<2x640xbf16>, vector<2x640xbf16>, vector<2x640xbf16> -> vector<18x640xbf16>
    %c0_6 = arith.constant 0 : index
    %c0_7 = arith.constant 0 : index
    %17 = vector.load %arg3[%c0_6, %c0_7] : memref<2x640xbf16, #tpu.memory_space<vmem>>, vector<2x640xbf16>
    %c0_8 = arith.constant 0 : index
    %c0_9 = arith.constant 0 : index
    %18 = vector.load %arg4[%c0_8, %c0_9] : memref<2x128xbf16, #tpu.memory_space<vmem>>, vector<2x128xbf16>
    %19 = tpu.concatenate %17, %18 in 1 : vector<2x640xbf16>, vector<2x128xbf16> -> vector<2x768xbf16>
    %20 = vector.extract_strided_slice %19 {offsets = [0, 0], sizes = [2, 640], strides = [1, 1]} : vector<2x768xbf16> to vector<2x640xbf16>
    %21 = vector.extract_strided_slice %19 {offsets = [0, 1], sizes = [2, 640], strides = [1, 1]} : vector<2x768xbf16> to vector<2x640xbf16>
    %22 = vector.extract_strided_slice %19 {offsets = [0, 2], sizes = [2, 640], strides = [1, 1]} : vector<2x768xbf16> to vector<2x640xbf16>
    %23 = vector.extract_strided_slice %19 {offsets = [0, 17], sizes = [2, 640], strides = [1, 1]} : vector<2x768xbf16> to vector<2x640xbf16>
    %24 = vector.extract_strided_slice %19 {offsets = [0, 18], sizes = [2, 640], strides = [1, 1]} : vector<2x768xbf16> to vector<2x640xbf16>
    %25 = vector.extract_strided_slice %19 {offsets = [0, 19], sizes = [2, 640], strides = [1, 1]} : vector<2x768xbf16> to vector<2x640xbf16>
    %26 = vector.extract_strided_slice %19 {offsets = [0, 34], sizes = [2, 640], strides = [1, 1]} : vector<2x768xbf16> to vector<2x640xbf16>
    %27 = vector.extract_strided_slice %19 {offsets = [0, 35], sizes = [2, 640], strides = [1, 1]} : vector<2x768xbf16> to vector<2x640xbf16>
    %28 = vector.extract_strided_slice %19 {offsets = [0, 36], sizes = [2, 640], strides = [1, 1]} : vector<2x768xbf16> to vector<2x640xbf16>
    %29 = tpu.concatenate %20, %21, %22, %23, %24, %25, %26, %27, %28 in 0 : vector<2x640xbf16>, vector<2x640xbf16>, vector<2x640xbf16>, vector<2x640xbf16>, vector<2x640xbf16>, vector<2x640xbf16>, vector<2x640xbf16>, vector<2x640xbf16>, vector<2x640xbf16> -> vector<18x640xbf16>
    %cst = arith.constant 0.000000e+00 : f32
    %30 = vector.broadcast %cst : f32 to vector<2x640xf32>
    %c0_10 = arith.constant 0 : index
    %c0_11 = arith.constant 0 : index
    %31 = vector.load %arg5[%c0_10, %c0_11] : memref<2x18xbf16, #tpu.memory_space<vmem>>, vector<2x18xbf16>
    %cst_12 = arith.constant dense<0.000000e+00> : vector<2x640xf32>
    %32 = tpu.matmul %31, %16, %cst_12 {dimension_numbers = #tpu.dot_dimension_numbers<[1], [0], [0], [1], [0, 0, 1, 1], [], []>} : vector<2x18xbf16>, vector<18x640xbf16>, vector<2x640xf32> -> vector<2x640xf32>
    %33 = arith.addf %30, %32 : vector<2x640xf32>
    %c0_13 = arith.constant 0 : index
    %c0_14 = arith.constant 0 : index
    %34 = vector.load %arg6[%c0_13, %c0_14] : memref<2x18xbf16, #tpu.memory_space<vmem>>, vector<2x18xbf16>
    %cst_15 = arith.constant dense<0.000000e+00> : vector<2x640xf32>
    %35 = tpu.matmul %34, %29, %cst_15 {dimension_numbers = #tpu.dot_dimension_numbers<[1], [0], [0], [1], [0, 0, 1, 1], [], []>} : vector<2x18xbf16>, vector<18x640xbf16>, vector<2x640xf32> -> vector<2x640xf32>
    %36 = arith.addf %33, %35 : vector<2x640xf32>
    %37 = arith.truncf %36 : vector<2x640xf32> to vector<2x640xbf16>
    %c0_16 = arith.constant 0 : index
    %c0_17 = arith.constant 0 : index
    %38 = vector.load %arg8[%c0_16, %c0_17] : memref<2x640xbf16, #tpu.memory_space<vmem>>, vector<2x640xbf16>
    tpu.vector_store %arg8[%c0_16, %c0_17], %37 {strides = array<i32>} : memref<2x640xbf16, #tpu.memory_space<vmem>>, vector<2x640xbf16>,
    %39 = vector.broadcast %3 : vector<1x640xf32> to vector<2x640xf32>
    %40 = arith.mulf %36, %39 : vector<2x640xf32>
    %cst_18 = arith.constant dense<0.000000e+00> : vector<2xf32>
    %41 = vector.multi_reduction <add>, %40, %cst_18 [1] : vector<2x640xf32> to vector<2xf32>
    %42 = vector.shape_cast %41 : vector<2xf32> to vector<2x1xf32>
    %43 = arith.mulf %40, %36 : vector<2x640xf32>
    %cst_19 = arith.constant dense<0.000000e+00> : vector<2xf32>
    %44 = vector.multi_reduction <add>, %43, %cst_19 [1] : vector<2x640xf32> to vector<2xf32>
    %45 = vector.shape_cast %44 : vector<2xf32> to vector<2x1xf32>
    %46 = tpu.concatenate %42, %45 in 1 : vector<2x1xf32>, vector<2x1xf32> -> vector<2x2xf32>
    %c0_20 = arith.constant 0 : index
    %c0_21 = arith.constant 0 : index
    %47 = vector.load %arg9[%c0_20, %c0_21] : memref<2x2xf32, #tpu.memory_space<vmem>>, vector<2x2xf32>
    %48 = arith.addf %47, %46 : vector<2x2xf32>
    %c0_22 = arith.constant 0 : index
    %c0_23 = arith.constant 0 : index
    %49 = vector.load %arg9[%c0_22, %c0_23] : memref<2x2xf32, #tpu.memory_space<vmem>>, vector<2x2xf32>
    tpu.vector_store %arg9[%c0_22, %c0_23], %48 {strides = array<i32>} : memref<2x2xf32, #tpu.memory_space<vmem>>, vector<2x2xf32>,
    return
  }
  func.func @transform_0(%arg0: i32) -> (i32, i32) {
    %c0_i32 = arith.constant 0 : i32
    %c0_i32_0 = arith.constant 0 : i32
    return %c0_i32, %arg0 : i32, i32
  }
  func.func @transform_1(%arg0: i32) -> (i32, i32) {
    %c1_i32 = arith.constant 1 : i32
    %0 = arith.addi %arg0, %c1_i32 : i32
    %c5_i32 = arith.constant 5 : i32
    %1 = arith.muli %0, %c5_i32 : i32
    %c0_i32 = arith.constant 0 : i32
    %c0_i32_0 = arith.constant 0 : i32
    return %c0_i32, %1 : i32, i32
  }
  func.func @transform_2(%arg0: i32) -> (i32, i32) {
    %c0_i32 = arith.constant 0 : i32
    %c0_i32_0 = arith.constant 0 : i32
    return %c0_i32, %arg0 : i32, i32
  }
  func.func @transform_3(%arg0: i32) -> (i32, i32) {
    %c1_i32 = arith.constant 1 : i32
    %0 = arith.addi %arg0, %c1_i32 : i32
    %c5_i32 = arith.constant 5 : i32
    %1 = arith.muli %0, %c5_i32 : i32
    %c0_i32 = arith.constant 0 : i32
    %c0_i32_0 = arith.constant 0 : i32
    return %c0_i32, %1 : i32, i32
  }
  func.func @transform_4(%arg0: i32) -> (i32, i32) {
    %c0_i32 = arith.constant 0 : i32
    %c0_i32_0 = arith.constant 0 : i32
    %c0_i32_1 = arith.constant 0 : i32
    return %c0_i32, %c0_i32_0 : i32, i32
  }
  func.func @transform_5(%arg0: i32) -> (i32, i32) {
    %c0_i32 = arith.constant 0 : i32
    %c0_i32_0 = arith.constant 0 : i32
    %c0_i32_1 = arith.constant 0 : i32
    return %c0_i32, %c0_i32_0 : i32, i32
  }
  func.func @transform_6(%arg0: i32) -> (i32, i32) {
    %c0_i32 = arith.constant 0 : i32
    %c0_i32_0 = arith.constant 0 : i32
    return %c0_i32, %arg0 : i32, i32
  }
  func.func @transform_7(%arg0: i32) -> (i32, i32) {
    %c0_i32 = arith.constant 0 : i32
    %c0_i32_0 = arith.constant 0 : i32
    return %c0_i32, %arg0 : i32, i32
  }
  func.func @transform_8(%arg0: i32) -> (i32, i32) {
    %c0_i32 = arith.constant 0 : i32
    %c0_i32_0 = arith.constant 0 : i32
    %c0_i32_1 = arith.constant 0 : i32
    return %c0_i32, %c0_i32_0 : i32, i32
  }
}

module attributes {stable_mosaic.version = 11 : i64} {
  func.func @_relu_repack_kernel(%arg0: i32, %arg1: memref<2x128xbf16, #tpu.memory_space<vmem>>, %arg2: memref<2x640xbf16, #tpu.memory_space<vmem>>, %arg3: memref<2x1xf32, #tpu.memory_space<vmem>>, %arg4: memref<2x1xf32, #tpu.memory_space<vmem>>, %arg5: memref<1x640xf32, #tpu.memory_space<vmem>>, %arg6: memref<2x640xbf16, #tpu.memory_space<vmem>>) attributes {dimension_semantics = [#tpu.dimension_semantics<parallel>], iteration_bounds = array<i64: 2>, scalar_prefetch = 0 : i64, scratch_operands = 0 : i64, tpu.core_type = #tpu.core_type<tc>, window_params = [{transform_indices = @transform_0, window_bounds = array<i64: 2, 128>}, {transform_indices = @transform_1, window_bounds = array<i64: 2, 640>}, {pipeline_mode = #tpu.pipeline_mode<synchronous>, transform_indices = @transform_2, window_bounds = array<i64: 2, 1>}, {pipeline_mode = #tpu.pipeline_mode<synchronous>, transform_indices = @transform_3, window_bounds = array<i64: 2, 1>}, {transform_indices = @transform_4, window_bounds = array<i64: 1, 640>}, {transform_indices = @transform_5, window_bounds = array<i64: 2, 640>}]} {
    %c0 = arith.constant 0 : index
    %c0_0 = arith.constant 0 : index
    %0 = vector.load %arg1[%c0, %c0_0] : memref<2x128xbf16, #tpu.memory_space<vmem>>, vector<2x128xbf16>
    %c0_1 = arith.constant 0 : index
    %c0_2 = arith.constant 0 : index
    %1 = vector.load %arg2[%c0_1, %c0_2] : memref<2x640xbf16, #tpu.memory_space<vmem>>, vector<2x640xbf16>
    %2 = tpu.concatenate %0, %1 in 1 : vector<2x128xbf16>, vector<2x640xbf16> -> vector<2x768xbf16>
    %3 = vector.extract_strided_slice %2 {offsets = [0, 110], sizes = [2, 640], strides = [1, 1]} : vector<2x768xbf16> to vector<2x640xbf16>
    %4 = arith.extf %3 : vector<2x640xbf16> to vector<2x640xf32>
    %c0_3 = arith.constant 0 : index
    %c0_4 = arith.constant 0 : index
    %5 = vector.load %arg3[%c0_3, %c0_4] : memref<2x1xf32, #tpu.memory_space<vmem>>, vector<2x1xf32>
    %6 = vector.broadcast %5 : vector<2x1xf32> to vector<2x640xf32>
    %7 = arith.mulf %4, %6 : vector<2x640xf32>
    %c0_5 = arith.constant 0 : index
    %c0_6 = arith.constant 0 : index
    %8 = vector.load %arg4[%c0_5, %c0_6] : memref<2x1xf32, #tpu.memory_space<vmem>>, vector<2x1xf32>
    %9 = vector.broadcast %8 : vector<2x1xf32> to vector<2x640xf32>
    %10 = arith.addf %7, %9 : vector<2x640xf32>
    %cst = arith.constant 0.000000e+00 : f32
    %11 = vector.broadcast %cst : f32 to vector<2x640xf32>
    %12 = arith.maximumf %10, %11 : vector<2x640xf32>
    %c0_7 = arith.constant 0 : index
    %c0_8 = arith.constant 0 : index
    %13 = vector.load %arg5[%c0_7, %c0_8] : memref<1x640xf32, #tpu.memory_space<vmem>>, vector<1x640xf32>
    %14 = vector.broadcast %13 : vector<1x640xf32> to vector<2x640xf32>
    %15 = arith.mulf %12, %14 : vector<2x640xf32>
    %16 = arith.truncf %15 : vector<2x640xf32> to vector<2x640xbf16>
    %c0_9 = arith.constant 0 : index
    %c0_10 = arith.constant 0 : index
    %17 = vector.load %arg6[%c0_9, %c0_10] : memref<2x640xbf16, #tpu.memory_space<vmem>>, vector<2x640xbf16>
    tpu.vector_store %arg6[%c0_9, %c0_10], %16 {strides = array<i32>} : memref<2x640xbf16, #tpu.memory_space<vmem>>, vector<2x640xbf16>,
    return
  }
  func.func @transform_0(%arg0: i32) -> (i32, i32) {
    %c5_i32 = arith.constant 5 : i32
    %0 = arith.muli %arg0, %c5_i32 : i32
    %c1_i32 = arith.constant 1 : i32
    %1 = arith.subi %0, %c1_i32 : i32
    %c0_i32 = arith.constant 0 : i32
    %2 = arith.maxsi %1, %c0_i32 : i32
    %c0_i32_0 = arith.constant 0 : i32
    %c0_i32_1 = arith.constant 0 : i32
    return %c0_i32_0, %2 : i32, i32
  }
  func.func @transform_1(%arg0: i32) -> (i32, i32) {
    %c0_i32 = arith.constant 0 : i32
    %c0_i32_0 = arith.constant 0 : i32
    return %c0_i32, %arg0 : i32, i32
  }
  func.func @transform_2(%arg0: i32) -> (i32, i32) {
    %c0_i32 = arith.constant 0 : i32
    %c0_i32_0 = arith.constant 0 : i32
    %c0_i32_1 = arith.constant 0 : i32
    return %c0_i32, %c0_i32_0 : i32, i32
  }
  func.func @transform_3(%arg0: i32) -> (i32, i32) {
    %c0_i32 = arith.constant 0 : i32
    %c0_i32_0 = arith.constant 0 : i32
    %c0_i32_1 = arith.constant 0 : i32
    return %c0_i32, %c0_i32_0 : i32, i32
  }
  func.func @transform_4(%arg0: i32) -> (i32, i32) {
    %c0_i32 = arith.constant 0 : i32
    %c0_i32_0 = arith.constant 0 : i32
    return %c0_i32, %arg0 : i32, i32
  }
  func.func @transform_5(%arg0: i32) -> (i32, i32) {
    %c0_i32 = arith.constant 0 : i32
    %c0_i32_0 = arith.constant 0 : i32
    return %c0_i32, %arg0 : i32, i32
  }
}

module attributes {stable_mosaic.version = 11 : i64} {
  func.func @kernel(%arg0: i32, %arg1: memref<2x640xbf16, #tpu.memory_space<vmem>>, %arg2: memref<2x128xbf16, #tpu.memory_space<vmem>>, %arg3: memref<2x8xbf16, #tpu.memory_space<vmem>>, %arg4: memref<1x640xf32, #tpu.memory_space<vmem>>, %arg5: memref<2x640xbf16, #tpu.memory_space<vmem>>, %arg6: memref<2x2xf32, #tpu.memory_space<vmem>>) attributes {dimension_semantics = [#tpu.dimension_semantics<arbitrary>], iteration_bounds = array<i64: 1>, scalar_prefetch = 0 : i64, scratch_operands = 0 : i64, tpu.core_type = #tpu.core_type<tc>, window_params = [{transform_indices = @transform_0, window_bounds = array<i64: 2, 640>}, {transform_indices = @transform_1, window_bounds = array<i64: 2, 128>}, {pipeline_mode = #tpu.pipeline_mode<synchronous>, transform_indices = @transform_2, window_bounds = array<i64: 2, 8>}, {transform_indices = @transform_3, window_bounds = array<i64: 1, 640>}, {transform_indices = @transform_4, window_bounds = array<i64: 2, 640>}, {pipeline_mode = #tpu.pipeline_mode<synchronous>, transform_indices = @transform_5, window_bounds = array<i64: 2, 2>}]} {
    %c0_i32 = arith.constant 0 : i32
    %0 = arith.cmpi eq, %arg0, %c0_i32 : i32
    %1 = arith.extui %0 : i1 to i32
    %c0_i32_0 = arith.constant 0 : i32
    %2 = arith.cmpi ne, %1, %c0_i32_0 : i32
    scf.if %2 {
      %cst_17 = arith.constant 0.000000e+00 : f32
      %29 = vector.broadcast %cst_17 : f32 to vector<2x2xf32>
      %c0_18 = arith.constant 0 : index
      %c0_19 = arith.constant 0 : index
      %30 = vector.load %arg6[%c0_18, %c0_19] : memref<2x2xf32, #tpu.memory_space<vmem>>, vector<2x2xf32>
      tpu.vector_store %arg6[%c0_18, %c0_19], %29 {strides = array<i32>} : memref<2x2xf32, #tpu.memory_space<vmem>>, vector<2x2xf32>,
    } else {
    }
    %c0 = arith.constant 0 : index
    %c0_1 = arith.constant 0 : index
    %3 = vector.load %arg4[%c0, %c0_1] : memref<1x640xf32, #tpu.memory_space<vmem>>, vector<1x640xf32>
    %c0_2 = arith.constant 0 : index
    %c0_3 = arith.constant 0 : index
    %4 = vector.load %arg1[%c0_2, %c0_3] : memref<2x640xbf16, #tpu.memory_space<vmem>>, vector<2x640xbf16>
    %c0_4 = arith.constant 0 : index
    %c0_5 = arith.constant 0 : index
    %5 = vector.load %arg2[%c0_4, %c0_5] : memref<2x128xbf16, #tpu.memory_space<vmem>>, vector<2x128xbf16>
    %6 = tpu.concatenate %4, %5 in 1 : vector<2x640xbf16>, vector<2x128xbf16> -> vector<2x768xbf16>
    %7 = vector.extract_strided_slice %6 {offsets = [0, 0], sizes = [2, 640], strides = [1, 1]} : vector<2x768xbf16> to vector<2x640xbf16>
    %8 = vector.extract_strided_slice %6 {offsets = [0, 1], sizes = [2, 640], strides = [1, 1]} : vector<2x768xbf16> to vector<2x640xbf16>
    %9 = vector.extract_strided_slice %6 {offsets = [0, 17], sizes = [2, 640], strides = [1, 1]} : vector<2x768xbf16> to vector<2x640xbf16>
    %10 = vector.extract_strided_slice %6 {offsets = [0, 18], sizes = [2, 640], strides = [1, 1]} : vector<2x768xbf16> to vector<2x640xbf16>
    %11 = tpu.concatenate %7, %8, %9, %10 in 0 : vector<2x640xbf16>, vector<2x640xbf16>, vector<2x640xbf16>, vector<2x640xbf16> -> vector<8x640xbf16>
    %cst = arith.constant 0.000000e+00 : f32
    %12 = vector.broadcast %cst : f32 to vector<2x640xf32>
    %c0_6 = arith.constant 0 : index
    %c0_7 = arith.constant 0 : index
    %13 = vector.load %arg3[%c0_6, %c0_7] : memref<2x8xbf16, #tpu.memory_space<vmem>>, vector<2x8xbf16>
    %cst_8 = arith.constant dense<0.000000e+00> : vector<2x640xf32>
    %14 = tpu.matmul %13, %11, %cst_8 {dimension_numbers = #tpu.dot_dimension_numbers<[1], [0], [0], [1], [0, 0, 1, 1], [], []>} : vector<2x8xbf16>, vector<8x640xbf16>, vector<2x640xf32> -> vector<2x640xf32>
    %15 = arith.addf %12, %14 : vector<2x640xf32>
    %16 = arith.truncf %15 : vector<2x640xf32> to vector<2x640xbf16>
    %c0_9 = arith.constant 0 : index
    %c0_10 = arith.constant 0 : index
    %17 = vector.load %arg5[%c0_9, %c0_10] : memref<2x640xbf16, #tpu.memory_space<vmem>>, vector<2x640xbf16>
    tpu.vector_store %arg5[%c0_9, %c0_10], %16 {strides = array<i32>} : memref<2x640xbf16, #tpu.memory_space<vmem>>, vector<2x640xbf16>,
    %18 = vector.broadcast %3 : vector<1x640xf32> to vector<2x640xf32>
    %19 = arith.mulf %15, %18 : vector<2x640xf32>
    %cst_11 = arith.constant dense<0.000000e+00> : vector<2xf32>
    %20 = vector.multi_reduction <add>, %19, %cst_11 [1] : vector<2x640xf32> to vector<2xf32>
    %21 = vector.shape_cast %20 : vector<2xf32> to vector<2x1xf32>
    %22 = arith.mulf %19, %15 : vector<2x640xf32>
    %cst_12 = arith.constant dense<0.000000e+00> : vector<2xf32>
    %23 = vector.multi_reduction <add>, %22, %cst_12 [1] : vector<2x640xf32> to vector<2xf32>
    %24 = vector.shape_cast %23 : vector<2xf32> to vector<2x1xf32>
    %25 = tpu.concatenate %21, %24 in 1 : vector<2x1xf32>, vector<2x1xf32> -> vector<2x2xf32>
    %c0_13 = arith.constant 0 : index
    %c0_14 = arith.constant 0 : index
    %26 = vector.load %arg6[%c0_13, %c0_14] : memref<2x2xf32, #tpu.memory_space<vmem>>, vector<2x2xf32>
    %27 = arith.addf %26, %25 : vector<2x2xf32>
    %c0_15 = arith.constant 0 : index
    %c0_16 = arith.constant 0 : index
    %28 = vector.load %arg6[%c0_15, %c0_16] : memref<2x2xf32, #tpu.memory_space<vmem>>, vector<2x2xf32>
    tpu.vector_store %arg6[%c0_15, %c0_16], %27 {strides = array<i32>} : memref<2x2xf32, #tpu.memory_space<vmem>>, vector<2x2xf32>,
    return
  }
  func.func @transform_0(%arg0: i32) -> (i32, i32) {
    %c0_i32 = arith.constant 0 : i32
    %c0_i32_0 = arith.constant 0 : i32
    return %c0_i32, %arg0 : i32, i32
  }
  func.func @transform_1(%arg0: i32) -> (i32, i32) {
    %c1_i32 = arith.constant 1 : i32
    %0 = arith.addi %arg0, %c1_i32 : i32
    %c5_i32 = arith.constant 5 : i32
    %1 = arith.muli %0, %c5_i32 : i32
    %c0_i32 = arith.constant 0 : i32
    %c0_i32_0 = arith.constant 0 : i32
    return %c0_i32, %1 : i32, i32
  }
  func.func @transform_2(%arg0: i32) -> (i32, i32) {
    %c0_i32 = arith.constant 0 : i32
    %c0_i32_0 = arith.constant 0 : i32
    %c0_i32_1 = arith.constant 0 : i32
    return %c0_i32, %c0_i32_0 : i32, i32
  }
  func.func @transform_3(%arg0: i32) -> (i32, i32) {
    %c0_i32 = arith.constant 0 : i32
    %c0_i32_0 = arith.constant 0 : i32
    return %c0_i32, %arg0 : i32, i32
  }
  func.func @transform_4(%arg0: i32) -> (i32, i32) {
    %c0_i32 = arith.constant 0 : i32
    %c0_i32_0 = arith.constant 0 : i32
    return %c0_i32, %arg0 : i32, i32
  }
  func.func @transform_5(%arg0: i32) -> (i32, i32) {
    %c0_i32 = arith.constant 0 : i32
    %c0_i32_0 = arith.constant 0 : i32
    %c0_i32_1 = arith.constant 0 : i32
    return %c0_i32, %c0_i32_0 : i32, i32
  }
}

module attributes {stable_mosaic.version = 11 : i64} {
  func.func @_scale_shift_relu_kernel(%arg0: i32, %arg1: memref<2x640xbf16, #tpu.memory_space<vmem>>, %arg2: memref<2x1xf32, #tpu.memory_space<vmem>>, %arg3: memref<2x1xf32, #tpu.memory_space<vmem>>, %arg4: memref<2x640xf32, #tpu.memory_space<vmem>>) attributes {dimension_semantics = [#tpu.dimension_semantics<parallel>], iteration_bounds = array<i64: 1>, scalar_prefetch = 0 : i64, scratch_operands = 0 : i64, tpu.core_type = #tpu.core_type<tc>, window_params = [{transform_indices = @transform_0, window_bounds = array<i64: 2, 640>}, {pipeline_mode = #tpu.pipeline_mode<synchronous>, transform_indices = @transform_1, window_bounds = array<i64: 2, 1>}, {pipeline_mode = #tpu.pipeline_mode<synchronous>, transform_indices = @transform_2, window_bounds = array<i64: 2, 1>}, {transform_indices = @transform_3, window_bounds = array<i64: 2, 640>}]} {
    %c0 = arith.constant 0 : index
    %c0_0 = arith.constant 0 : index
    %0 = vector.load %arg1[%c0, %c0_0] : memref<2x640xbf16, #tpu.memory_space<vmem>>, vector<2x640xbf16>
    %1 = arith.extf %0 : vector<2x640xbf16> to vector<2x640xf32>
    %c0_1 = arith.constant 0 : index
    %c0_2 = arith.constant 0 : index
    %2 = vector.load %arg2[%c0_1, %c0_2] : memref<2x1xf32, #tpu.memory_space<vmem>>, vector<2x1xf32>
    %3 = vector.broadcast %2 : vector<2x1xf32> to vector<2x640xf32>
    %4 = arith.mulf %1, %3 : vector<2x640xf32>
    %c0_3 = arith.constant 0 : index
    %c0_4 = arith.constant 0 : index
    %5 = vector.load %arg3[%c0_3, %c0_4] : memref<2x1xf32, #tpu.memory_space<vmem>>, vector<2x1xf32>
    %6 = vector.broadcast %5 : vector<2x1xf32> to vector<2x640xf32>
    %7 = arith.addf %4, %6 : vector<2x640xf32>
    %cst = arith.constant 0.000000e+00 : f32
    %8 = vector.broadcast %cst : f32 to vector<2x640xf32>
    %9 = arith.maximumf %7, %8 : vector<2x640xf32>
    %c0_5 = arith.constant 0 : index
    %c0_6 = arith.constant 0 : index
    %10 = vector.load %arg4[%c0_5, %c0_6] : memref<2x640xf32, #tpu.memory_space<vmem>>, vector<2x640xf32>
    tpu.vector_store %arg4[%c0_5, %c0_6], %9 {strides = array<i32>} : memref<2x640xf32, #tpu.memory_space<vmem>>, vector<2x640xf32>,
    return
  }
  func.func @transform_0(%arg0: i32) -> (i32, i32) {
    %c0_i32 = arith.constant 0 : i32
    %c0_i32_0 = arith.constant 0 : i32
    return %c0_i32, %arg0 : i32, i32
  }
  func.func @transform_1(%arg0: i32) -> (i32, i32) {
    %c0_i32 = arith.constant 0 : i32
    %c0_i32_0 = arith.constant 0 : i32
    %c0_i32_1 = arith.constant 0 : i32
    return %c0_i32, %c0_i32_0 : i32, i32
  }
  func.func @transform_2(%arg0: i32) -> (i32, i32) {
    %c0_i32 = arith.constant 0 : i32
    %c0_i32_0 = arith.constant 0 : i32
    %c0_i32_1 = arith.constant 0 : i32
    return %c0_i32, %c0_i32_0 : i32, i32
  }
  func.func @transform_3(%arg0: i32) -> (i32, i32) {
    %c0_i32 = arith.constant 0 : i32
    %c0_i32_0 = arith.constant 0 : i32
    return %c0_i32, %arg0 : i32, i32
  }
}

</mosaic_0001>

<bundles_post_ra>
// kernel: expanding_block_forward.5
= control target key start
LH: loop header
LB: loop body
LE: loop exit
PB: predicated region body
PF: predicated region fallthrough
CT: control target
= control target key end

     0   :  { %v47_v0 = vlaneseq  ;;  %v313_v3 = vmov 1983009808   ;;  %s314_s19 = smov 127   ;;  %v317_v24 = vmov 0   ;;  %vm76_vm0 = vcmask 1039360   ;;  %s409_s1 = inlined_call_operand.vmem [shape: bf16[4,1024], index: 1, kind: input, shape index: {}, may-alias: {0,1}]   ;;  %s410_s0 = inlined_call_operand.vmem [shape: bf16[4,1024], index: 0, kind: input, shape index: {}, may-alias: {0,1}]   ;;  %s411_s3 = inlined_call_operand.vmem [shape: f32[2,1], index: 3, kind: input, shape index: {}]   ;;  %s412_s2 = inlined_call_operand.vmem [shape: bf16[2,16], index: 2, kind: input, shape index: {}]   ;;  %s413_s4 = inlined_call_operand.vmem [shape: bf16[2,512], index: 4, kind: output, shape index: {}]  }
   0x1   :  { %v298_v1 = vld [vmem:[%s409_s1 + $0x8] sm:$0x3]  ;;  %v40_v2 = vld [vmem:[%s410_s0] sm:$0xff]  ;;  %v45_v4 = vunpack.c.l.s4 %v313_v3  ;;  %s315_s0 = smov 112   ;;  %s316_s1 = smov 111   ;;  %241 = vmatprep.mubr.bf16.mxu1 %v317_v24  ;;  %200 = vmatprep.mubr.bf16.mxu0 %v317_v24  ;;  %vm96_vm1 = vcmask 916480  }
   0x2   :  { %v65_v5 = vrot.slane %v298_v1, 6  ;;  %v350_v6 = vshrl.u32 %v47_v0, 7  ;;  %v43_v8 = vcombine.high %v40_v2, %v40_v2  ;;  %v85_v20 = vrot.slane %v298_v1, 4  ;;  %310 = vset.pattern.permute.xlu1 %v317_v24  ;;  %311 = vset.pattern.permute.xlu0 %v317_v24  ;;  %v156_v26 = vld [vmem:[%s411_s3] sm:$0x3] }
   0x3   :  { %v46_v7 = vunpack.c.0.s8 %v45_v4  ;;  %v105_v23 = vrot.slane %v298_v1, 2  ;;  %vm121_vm2 = vcmask 1041408   ;;  %vm116_vm3 = vcmask 908288   ;;  %v163_v0 = vld [vmem:[%s412_s2] sm:$0x1] }
   0x4   :  { %74 = vrot.lane.b32.xlu1 %v65_v5, %s314_s19  ;;  %vm143_vm4 = vcmask 1045504   ;;  %vm134_vm5 = vcmask 1043456   ;;  %vm164_vm6 = vcmask 130048   ;;  %v318_v4 = vmov 1966171168  }
   0x5   :  { %v49_v9 = vsub.s32 %v46_v7, %v350_v6  ;;  %v265_v5 = vunpack.c.l.s4 %v318_v4 }
   0x7   :  { %v353_v10 = vrot.slane %v40_v2, %v49_v9  ;;  %v355_v11 = vrot.slane %v43_v8, %v49_v9  ;;  %v266_v8 = vunpack.c.0.s8 %v265_v5 }
   0x9   :  { %v58_v12 = vcombine.high %v353_v10, %v353_v10  ;;  %v63_v13 = vrot.slane %v355_v11, 6  ;;  %v61_v14 = vrot.slane %v353_v10, 6  ;;  %v363_v15 = vcombine.high %v355_v11, %v355_v11 }
   0xa   :  { %v83_v16 = vrot.slane %v355_v11, 4  ;;  %v81_v19 = vrot.slane %v353_v10, 4  ;;  %v103_v21 = vrot.slane %v355_v11, 2  ;;  %v101_v27 = vrot.slane %v353_v10, 2 }
   0xb   :  { %88 = vrot.lane.b32.xlu1 %v58_v12, %s315_s0  ;;  %70 = vrot.lane.b32.xlu0 %v63_v13, %s314_s19  ;;  %v64_v17 = vrot.slane %v363_v15, 6  ;;  %v62_v18 = vrot.slane %v58_v12, 6  ;;  %v102_v22 = vrot.slane %v58_v12, 2  ;;  %v104_v25 = vrot.slane %v363_v15, 2 }
   0xf   :  { %66 = vrot.lane.b32.xlu0 %v61_v14, %s314_s19  ;;  %92 = vrot.lane.b32.xlu1 %v363_v15, %s315_s0 }
  0x13   :  { %90 = vrot.lane.b32.xlu0 %v83_v16, %s315_s0  ;;  %72 = vrot.lane.b32.xlu1 %v64_v17, %s314_s19  ;;  %v269_v16 = vsub.s32 %v266_v8, %v350_v6 }
  0x17   :  { %68 = vrot.lane.b32.xlu0 %v62_v18, %s314_s19  ;;  %86 = vrot.lane.b32.xlu1 %v81_v19, %s315_s0 }
  0x1b   :  { %94 = vrot.lane.b32.xlu0 %v85_v20, %s315_s0  ;;  %110 = vrot.lane.b32.xlu1 %v103_v21, %s316_s1 }
  0x1f   :  { %108 = vrot.lane.b32.xlu0 %v102_v22, %s316_s1  ;;  %114 = vrot.lane.b32.xlu1 %v105_v23, %s316_s1 }
  0x23   :  { %112 = vrot.lane.b32.xlu0 %v104_v25, %s316_s1  ;;  %159 = vperm.xlu1 %310, %v156_v26  }
  0x27   :  { %106 = vrot.lane.b32.xlu0 %v101_v27, %s316_s1 }
  0x76   :  { %v75_v28 = vpop.permute.xlu1 %74 }
  0x7d   :  { %v89_v29 = vpop.permute.xlu1 %88  ;;  %v71_v30 = vpop.permute.xlu0 %70 }
  0x81   :  { %v67_v31 = vpop.permute.xlu0 %66  ;;  %v93_v32 = vpop.permute.xlu1 %92 }
  0x85   :  { %v91_v33 = vpop.permute.xlu0 %90  ;;  %v73_v34 = vpop.permute.xlu1 %72 }
  0x86   :  { %v79_v41 = vsel %vm76_vm0, %v71_v30, %v73_v34  ;;  %v98_v42 = vsel %vm96_vm1, %v89_v29, %v91_v33  ;;  %v80_v44 = vsel %vm76_vm0, %v73_v34, %v75_v28  ;;  %v99_v47 = vsel %vm96_vm1, %v91_v33, %v93_v32 }
  0x87   :  { %v130_v48 = vsel %vm121_vm2, %v355_v11, %v79_v41  ;;  %v133_v53 = vsel %vm121_vm2, %v363_v15, %v80_v44 }
  0x88   :  { %v140_v58 = vsel %vm134_vm5, %v130_v48, %v99_v47 }
  0x89   :  { %v69_v35 = vpop.permute.xlu0 %68  ;;  %v87_v36 = vpop.permute.xlu1 %86 }
  0x8a   :  { %v78_v37 = vsel %vm76_vm0, %v69_v35, %v71_v30  ;;  %v77_v52 = vsel %vm76_vm0, %v67_v31, %v69_v35  ;;  %v97_v60 = vsel %vm96_vm1, %v87_v36, %v89_v29 }
  0x8b   :  { %v127_v40 = vsel %vm121_vm2, %v58_v12, %v78_v37  ;;  %v124_v59 = vsel %vm121_vm2, %v353_v10, %v77_v52 }
  0x8c   :  { %v138_v46 = vsel %vm134_vm5, %v127_v40, %v98_v42  ;;  %v136_v2 = vsel %vm134_vm5, %v124_v59, %v97_v60 }
  0x8d   :  { %v95_v38 = vpop.permute.xlu0 %94  ;;  %v111_v39 = vpop.permute.xlu1 %110 }
  0x8e   :  { %v100_v49 = vsel %vm96_vm1, %v93_v32, %v95_v38 }
  0x8f   :  { %v142_v57 = vsel %vm134_vm5, %v133_v53, %v100_v49 }
  0x91   :  { %v109_v43 = vpop.permute.xlu0 %108  ;;  %v115_v51 = vpop.permute.xlu1 %114 }
  0x92   :  { %v118_v45 = vsel %vm116_vm3, %v109_v43, %v111_v39 }
  0x93   :  { %v148_v50 = vsel %vm143_vm4, %v138_v46, %v118_v45 }
  0x94   :  { %168 = vmatprep.subr.bf16.mxu0 %v148_v50 }
  0x95   :  { %v113_v54 = vpop.permute.xlu0 %112 }
  0x96   :  { %v119_v55 = vsel %vm116_vm3, %v111_v39, %v113_v54  ;;  %v120_v56 = vsel %vm116_vm3, %v113_v54, %v115_v51 }
  0x97   :  { %v154_v61 = vsel %vm143_vm4, %v142_v57, %v120_v56  ;;  %v151_v62 = vsel %vm143_vm4, %v140_v58, %v119_v55 }
  0x98   :  { %209 = vmatprep.subr.bf16.mxu1 %v154_v61 }
  0x99   :  { %v107_v63 = vpop.permute.xlu0 %106  ;;  %210 = vmatpush1.bf16.msra.mxu1 %v151_v62 }
  0x9a   :  { %v117_v1 = vsel %vm116_vm3, %v107_v63, %v109_v43 }
  0x9b   :  { %v145_v3 = vsel %vm143_vm4, %v136_v2, %v117_v1 }
  0x9c   :  { %169 = vmatpush1.bf16.msra.mxu0 %v145_v3  ;;  %300 = vmatmul.mubr.msk.bf16.vlgmr.msra.gmra.mrb[0].mxu1 %vm164_vm6, %v163_v0 }
  0x9f   :  { %299 = vmatmul.mubr.msk.bf16.vlgmr.msra.gmra.mrb[0].mxu0 %vm164_vm6, %v163_v0 }
  0xa2   :  { %v160_v7 = vpop.permute.xlu1 %159 }
 0x16f   :  { %v243_v9 = vpop.f32.mrb[0].mxu1 }
 0x170   :  { %v245_v10 = vpop.f32.mrb[1].mxu1  ;;  %v252_v11 = vadd.f32 %v243_v9, %v160_v7 }
 0x171   :  { %v247_v12 = vpop.f32.mrb[2].mxu1  ;;  %v253_v13 = vadd.f32 %v245_v10, %v160_v7 }
 0x172   :  { %v202_v14 = vpop.f32.mrb[0].mxu0  ;;  %v248_v15 = vpop.f32.mrb[3].mxu1 }
 0x173   :  { %v250_v17 = vadd.f32 %v202_v14, %v160_v7  ;;  %v302_v18 = vpack.c.bf16 %v253_v13, %v252_v11  ;;  %v204_v19 = vpop.f32.mrb[1].mxu0 }
 0x174   :  { %v251_v20 = vadd.f32 %v204_v19, %v160_v7  ;;  %v206_v21 = vpop.f32.mrb[2].mxu0 }
 0x175   :  { %v207_v22 = vpop.f32.mrb[3].mxu0  ;;  %v277_v24 = vrot.slane %v302_v18, %v269_v16 }
 0x176   :  { %v301_v23 = vpack.c.bf16 %v251_v20, %v250_v17 }
 0x178   :  { %v270_v25 = vrot.slane %v301_v23, %v269_v16 }
 0x17a   :  { %v278_v26 = vcombine.low %v270_v25, %v277_v24 }
 0x17c   :  { %303 = vst.sshfl [vmem:[%s413_s4] sm:$0x55 pattern:$0x73625140] %v278_v26 }

// kernel: expanding_block_forward.7
= control target key start
LH: loop header
LB: loop body
LE: loop exit
PB: predicated region body
PF: predicated region fallthrough
CT: control target
= control target key end

     0   :  { %s616_s18 = smov 0   ;;  %s671_s0 = inlined_call_operand.vmem [shape: bf16[2,1280], index: 0, kind: input, shape index: {}, may-alias: {0,1}]   ;;  %s672_s1 = inlined_call_operand.vmem [shape: bf16[2,1280], index: 1, kind: input, shape index: {}, may-alias: {0,1}]   ;;  %s673_s2 = inlined_call_operand.vmem [shape: f32[2,1], index: 2, kind: input, shape index: {}]   ;;  %s674_s3 = inlined_call_operand.vmem [shape: f32[2,1], index: 3, kind: input, shape index: {}]   ;;  %s675_s4 = inlined_call_operand.vmem [shape: f32[1,1280], index: 4, kind: input, shape index: {}]   ;;  %s676_s5 = inlined_call_operand.vmem [shape: bf16[2,1280], index: 5, kind: output, shape index: {}]  }
   0x1 LB: > { %s540_s19 = sadd.s32 4294967295, %s580_s18   ;;  %p546_p0 = scmp.ge.s32.totalorder %s580_s18, 1  ;;  %s580_s18 = sphi %s616_s18, %s15_s18  }
   0x2   : > { %p221_p1 = scmp.lt.s32.totalorder %s580_s18, 3 }
   0x4   : > { %p222_p2 = pnand %p546_p0, %p221_p1 }
   0x5   : > { %v337_v0 = vld [vmem:[%s673_s2] sm:$0x3] (!%p222_p2)  ;;  %s627_s22 = smul.u32 (!%p222_p2), 5, %s540_s19  ;;  %v291_v1 = vlaneseq (!%p222_p2)  ;;  %v582_v2 = vmov (!%p222_p2), 0   ;;  %v583_v3 = vmov (!%p222_p2), 1966171168  }
   0x6   : > { %225 = sbr.rel (%p222_p2) target bundleno = 277 (0x115), region = 40  ;;  %572 = vset.pattern.permute.xlu0 (!%p222_p2), %v582_v2  ;;  %v289_v4 = vunpack.c.l.s4 (!%p222_p2), %v583_v3  ;;  %v349_v6 = vld [vmem:[%s674_s3] sm:$0x3] (!%p222_p2)  ;;  %s584_s7 = smov (!%p222_p2), 110   ;;  %vm399_vm0 = vcmask (!%p222_p2), 900096   ;;  %vm471_vm1 = vcmask (!%p222_p2), 146432  }
   0x7   : > { %340 = vperm.xlu0 (!%p222_p2), %572, %v337_v0   ;;  %p270_p3 = scmp.lt.s32.totalorder (!%p222_p2), %s627_s22, 9  ;;  %v292_v5 = vshrl.u32 (!%p222_p2), %v291_v1, 7  ;;  %s547_s8 = sadd.s32 (!%p222_p2), 4294967295, %s627_s22 }
   0x8   : > { %v290_v7 = vunpack.c.0.s8 (!%p222_p2), %v289_v4  ;;  %p260_p4 = scmp.gt.s32.totalorder (!%p222_p2), %s547_s8, 0  ;;  %p548_p5 = scmp.lt.s32.totalorder (!%p222_p2), %s547_s8, 9 }
   0x9   : > { %v371_v8 = vsub.s32 (!%p222_p2), 0, %v292_v5  ;;  %v379_v9 = vsub.s32 (!%p222_p2), 2, %v292_v5  ;;  %v375_v11 = vsub.s32 (!%p222_p2), 1, %v292_v5  ;;  %v387_v12 = vsub.s32 (!%p222_p2), 4, %v292_v5  ;;  %s585_s12 = smov (!%p222_p2), 18  }
   0xa   : > { %v640_v10 = vsub.s32 (!%p222_p2), %v290_v7, %v292_v5  ;;  %v383_v20 = vsub.s32 (!%p222_p2), 3, %v292_v5 }
   0xb   : > { %352 = vperm.xlu0 (!%p222_p2), %572, %v349_v6  }
   0xd   : > { %s634_s25 = scalar_select %p270_p3, %s627_s22, 9 }
   0xe   : > { %s678_s8 = smov (!%p260_p4, %s547_s8), 0 }
   0xf   : > { %s277_s28 = scalar_lea.vmem %s675_s4, %s634_s25  ;;  %s272_s6 = scalar_lea.vmem %s672_s1, %s634_s25 }
  0x10   : > { %v367_v13 = vld [vmem:[%s277_s28] sm:$0x1f]  ;;  %s680_s8 = smov (!%p548_p5, %s678_s8), 9  ;;  %s282_s15 = scalar_lea.vmem %s676_s5, %s634_s25 }
  0x11   : > { %v285_v14 = vld [vmem:[%s272_s6] sm:$0x1f]  ;;  %v372_v15 = vrot.slane %v367_v13, %v371_v8  ;;  %v380_v16 = vrot.slane %v367_v13, %v379_v9  ;;  %v376_v19 = vrot.slane %v367_v13, %v375_v11  ;;  %v388_v21 = vrot.slane %v367_v13, %v387_v12  ;;  %s264_s11 = scalar_lea.vmem %s671_s0, %s680_s8 }
  0x12   : > { %v294_v17 = vrot.slane %v285_v14, %v640_v10  ;;  %v287_v18 = vcombine.high %v285_v14, %v285_v14  ;;  %v384_v27 = vrot.slane %v367_v13, %v383_v20  ;;  %v284_v30 = vld [vmem:[%s264_s11] sm:$0x1] }
  0x13   : > { %389 = vrot.lane.b32.xlu1 %v372_v15, %s584_s7  ;;  %393 = vrot.lane.b32.xlu0 %v380_v16, %s584_s7  ;;  %v331_v32 = vunpack.c.l.bf16 %v284_v30 }
  0x14   : > { %v309_v22 = vrot.slane %v294_v17, %v640_v10  ;;  %v302_v23 = vcombine.high %v294_v17, %v294_v17  ;;  %v301_v24 = vrot.slane %v287_v18, %v640_v10 }
  0x16   : > { %v323_v25 = vrot.slane %v302_v23, %v640_v10  ;;  %v316_v26 = vrot.slane %v301_v24, %v640_v10  ;;  %v324_v28 = vcombine.high %v309_v22, %v309_v22  ;;  %v332_v33 = vunpack.c.l.bf16 %v309_v22 }
  0x17   : > { %391 = vrot.lane.b32.xlu1 %v376_v19, %s584_s7  ;;  %397 = vrot.lane.b32.xlu0 %v388_v21, %s584_s7 }
  0x18   : > { %v325_v31 = vcombine.high %v323_v25, %v323_v25  ;;  %v333_v34 = vunpack.c.l.bf16 %v323_v25  ;;  %v334_v35 = vunpack.c.l.bf16 %v324_v28  ;;  %v336_v37 = vunpack.c.l.bf16 %v316_v26 }
  0x1a   : > { %v335_v39 = vunpack.c.l.bf16 %v325_v31 }
  0x1b   : > { %395 = vrot.lane.b32.xlu1 %v384_v27, %s584_s7 }
  0x85   : > { %v390_v29 = vpop.permute.xlu1 %389 }
  0x86   : > { %v341_v36 = vpop.permute.xlu0 %340 }
  0x87   : > { %v343_v40 = vmul.f32 %v341_v36, %v331_v32  ;;  %v344_v41 = vmul.f32 %v341_v36, %v332_v33  ;;  %v345_v42 = vmul.f32 %v341_v36, %v333_v34  ;;  %v346_v43 = vmul.f32 %v341_v36, %v334_v35 }
  0x88   : > { %v348_v45 = vmul.f32 %v341_v36, %v336_v37  ;;  %v347_v51 = vmul.f32 %v341_v36, %v335_v39 }
  0x89   : > { %v392_v38 = vpop.permute.xlu1 %391 }
  0x8a   : > { %v353_v44 = vpop.permute.xlu0 %352  ;;  %v400_v57 = vsel %vm399_vm0, %v390_v29, %v392_v38 }
  0x8b   : > { %v355_v46 = vadd.f32 %v353_v44, %v343_v40  ;;  %v356_v47 = vadd.f32 %v353_v44, %v344_v41  ;;  %v357_v48 = vadd.f32 %v353_v44, %v345_v42  ;;  %v358_v49 = vadd.f32 %v353_v44, %v346_v43 }
  0x8c   : > { %v360_v52 = vadd.f32 %v353_v44, %v348_v45  ;;  %v359_v59 = vadd.f32 %v353_v44, %v347_v51 }
  0x8d   : > { %v396_v50 = vpop.permute.xlu1 %395  ;;  %v361_v53 = vmax.f32 %v355_v46, 0.0  ;;  %v362_v54 = vmax.f32 %v356_v47, 0.0  ;;  %v363_v55 = vmax.f32 %v357_v48, 0.0  ;;  %v364_v56 = vmax.f32 %v358_v49, 0.0 }
  0x8e   : > { %v394_v58 = vpop.permute.xlu0 %393  ;;  %v366_v2 = vmax.f32 %v360_v52, 0.0  ;;  %v365_v6 = vmax.f32 %v359_v59, 0.0 }
  0x8f   : > { %v401_v60 = vsel %vm399_vm0, %v392_v38, %v394_v58  ;;  %v402_v61 = vsel %vm399_vm0, %v394_v58, %v396_v50  ;;  %v410_v62 = vmul.f32 %v390_v29, %v361_v53  ;;  %v411_v63 = vmul.f32 %v400_v57, %v362_v54 }
  0x90   : > { %v412_v0 = vmul.f32 %v401_v60, %v363_v55  ;;  %v413_v1 = vmul.f32 %v402_v61, %v364_v56 }
  0x91   : > { %v553_v3 = vpack.c.bf16 %v411_v63, %v410_v62 }
  0x92   : > { %v554_v4 = vpack.c.bf16 %v413_v1, %v412_v0  ;;  %v398_v5 = vpop.permute.xlu0 %397 }
  0x93   : > { %v403_v7 = vsel %vm399_vm0, %v396_v50, %v398_v5  ;;  %v415_v8 = vmul.f32 %v398_v5, %v366_v2  ;;  %v437_v9 = vrot.slane %v553_v3, %v640_v10 }
  0x94   : > { %v444_v11 = vrot.slane %v554_v4, %v640_v10  ;;  %v414_v12 = vmul.f32 %v403_v7, %v365_v6 }
  0x96   : > { %v555_v13 = vpack.c.bf16 %v415_v8, %v414_v12  ;;  %v452_v14 = vcombine.low %v437_v9, %v444_v11 }
  0x98   : > { %v451_v15 = vrot.slane %v555_v13, %v640_v10  ;;  %v459_v16 = vrot.slane %v452_v14, %v640_v10 }
  0x9a   : > { %v466_v17 = vrot.slane %v451_v15, %v640_v10 }
  0x9c   : > { %v467_v18 = vcombine.low %v459_v16, %v466_v17 }
  0x9e   : > { %468 = vrot.lane.b32.xlu1 %v467_v18, %s585_s12 }
 0x110   : > { %v469_v19 = vpop.permute.xlu1 %468 }
 0x111   : > { %v470_v20 = vrot.slane %v469_v19, 1 }
 0x113   : > { %v472_v21 = vsel %vm471_vm1, %v469_v19, %v470_v20 }
 0x114   : > { %474 = vst [vmem:[%s282_s15] sm:$0x1f] %v472_v21 }
 0x115 PF: > { %s15_s18 = sadd.s32 1, %s580_s18  }
 0x116   : > { %p12_p6 = scmp.ge.s32.totalorder %s15_s18, 4  }
 0x118   :  { %14 = sbr.rel (!%p12_p6) target bundleno = 1 (0x1), region = 76 }

// kernel: expanding_block_forward.9
= control target key start
LH: loop header
LB: loop body
LE: loop exit
PB: predicated region body
PF: predicated region fallthrough
CT: control target
= control target key end

     0   :  { %v58_v0 = vmov 0   ;;  %v59_v3 = vmov 269488144   ;;  %v25_v5 = vlaneseq  ;;  %s95_s1 = inlined_call_operand.vmem [shape: f32[2,1], index: 1, kind: input, shape index: {}]   ;;  %s96_s2 = inlined_call_operand.vmem [shape: f32[2,1], index: 2, kind: input, shape index: {}]   ;;  %s97_s0 = inlined_call_operand.vmem [shape: bf16[2,640], index: 0, kind: input, shape index: {}]   ;;  %s98_s3 = inlined_call_operand.vmem [shape: f32[2,640], index: 3, kind: output, shape index: {}]  }
   0x1   :  { %57 = vset.pattern.permute.xlu0 %v58_v0  ;;  %v17_v1 = vld [vmem:[%s95_s1] sm:$0x3]  ;;  %v23_v4 = vunpack.c.l.s4 %v59_v3 }
   0x2   :  { %20 = vperm.xlu0 %57, %v17_v1   ;;  %v32_v2 = vld [vmem:[%s96_s2] sm:$0x3]  ;;  %v26_v7 = vshrl.u32 %v25_v5, 7 }
   0x3   :  { %v24_v6 = vunpack.c.0.s8 %v23_v4  ;;  %v14_v9 = vld [vmem:[%s97_s0] sm:$0x1f] }
   0x4   :  { %v15_v11 = vunpack.c.l.bf16 %v14_v9  ;;  %v16_v12 = vunpack.c.h.bf16 %v14_v9 }
   0x5   :  { %v27_v8 = vsub.s32 %v24_v6, %v26_v7 }
   0x6   :  { %35 = vperm.xlu0 %57, %v32_v2  }
  0x81   :  { %v21_v10 = vpop.permute.xlu0 %20 }
  0x82   :  { %v28_v13 = vrot.slane %v21_v10, %v27_v8 }
  0x84   :  { %v30_v15 = vmul.f32 %v28_v13, %v15_v11  ;;  %v31_v16 = vmul.f32 %v28_v13, %v16_v12 }
  0x85   :  { %v36_v14 = vpop.permute.xlu0 %35 }
  0x86   :  { %v43_v17 = vrot.slane %v36_v14, %v27_v8 }
  0x88   :  { %v45_v18 = vadd.f32 %v43_v17, %v30_v15  ;;  %v46_v19 = vadd.f32 %v43_v17, %v31_v16 }
  0x8a   :  { %v47_v20 = vmax.f32 %v45_v18, 0.0  ;;  %v48_v21 = vmax.f32 %v46_v19, 0.0 }
  0x8c   :  { %49 = vst [vmem:[%s98_s3] sm:$0xff] %v47_v20  ;;  %50 = vst [vmem:[%s98_s3 + $0x8] sm:$0x3] %v48_v21 }

// kernel: expanding_block_forward.8
= control target key start
LH: loop header
LB: loop body
LE: loop exit
PB: predicated region body
PF: predicated region fallthrough
CT: control target
= control target key end

     0   :  { %v53_v0 = vlaneseq  ;;  %v487_v1 = vmov 1966171168   ;;  %s488_s20 = smov 111   ;;  %s490_s21 = smov 110   ;;  %v491_v26 = vmov 0   ;;  %vm43_vm0 = vcmask 9216   ;;  %s670_s0 = inlined_call_operand.vmem [shape: bf16[2,1280], index: 0, kind: input, shape index: {}, may-alias: {0,1}]   ;;  %s671_s1 = inlined_call_operand.vmem [shape: bf16[2,1280], index: 1, kind: input, shape index: {}, may-alias: {0,1}]   ;;  %s672_s5 = inlined_call_operand.vmem [shape: f32[2,2], index: 5, kind: output, shape index: {1}]   ;;  %s673_s2 = inlined_call_operand.vmem [shape: bf16[2,8], index: 2, kind: input, shape index: {}]   ;;  %s674_s3 = inlined_call_operand.vmem [shape: f32[1,640], index: 3, kind: input, shape index: {}]   ;;  %s675_s4 = inlined_call_operand.vmem [shape: bf16[2,640], index: 4, kind: output, shape index: {0}]  }
   0x1   :  { %v51_v2 = vunpack.c.l.s4 %v487_v1  ;;  %v46_v5 = vld [vmem:[%s670_s0] sm:$0x1f]  ;;  %s489_s0 = smov 127   ;;  %247 = vmatprep.mubr.bf16.mxu0 %v491_v26  ;;  %288 = vmatprep.mubr.bf16.mxu1 %v491_v26  ;;  %v463_v31 = vld [vmem:[%s671_s1 + $0x5] sm:$0x1]  ;;  %v492_v32 = vmov 0.0  }
   0x2   :  { %v524_v3 = vshrl.u32 %v53_v0, 7  ;;  %v49_v18 = vcombine.high %v46_v5, %v46_v5  ;;  %44 = vst.msk [vmem:[%s672_s5] sm:$0x3] %vm43_vm0, %v492_v32  ;;  %v94_v33 = vrot.slane %v463_v31, 7  ;;  %v142_v35 = vrot.slane %v463_v31, 5 }
   0x3   :  { %v52_v4 = vunpack.c.0.s8 %v51_v2  ;;  %v118_v36 = vrot.slane %v463_v31, 6  ;;  %vm107_vm1 = vcmask 1039360   ;;  %vm161_vm2 = vcmask 1040384   ;;  %v199_v62 = vld [vmem:[%s673_s2] sm:$0x1] }
   0x4   :  { %vm155_vm3 = vcmask 900096   ;;  %vm131_vm4 = vcmask 908288   ;;  %vm177_vm5 = vcmask 1041408   ;;  %vm188_vm6 = vcmask 1042432  }
   0x5   :  { %v530_v6 = vsub.s32 %v52_v4, %v524_v3  ;;  %vm204_vm7 = vcmask 1043456   ;;  %vm200_vm8 = vcmask 64512   ;;  %vm493_vm9 = vmmov 0  }
   0x6   :  { %vm446_vm10 = vcmask 7168  }
   0x7   :  { %v56_v7 = vrot.slane %v46_v5, %v530_v6  ;;  %v63_v22 = vrot.slane %v49_v18, %v530_v6 }
   0x9   :  { %v534_v8 = vrot.slane %v56_v7, %v530_v6  ;;  %v64_v9 = vcombine.high %v56_v7, %v56_v7  ;;  %v567_v25 = vrot.slane %v63_v22, %v530_v6 }
   0xb   :  { %v113_v10 = vrot.slane %v534_v8, 6  ;;  %v89_v11 = vrot.slane %v534_v8, 7  ;;  %v540_v12 = vcombine.high %v534_v8, %v534_v8  ;;  %v137_v13 = vrot.slane %v534_v8, 5 }
   0xc   :  { %v547_v15 = vrot.slane %v64_v9, %v530_v6  ;;  %v93_v28 = vrot.slane %v567_v25, 7  ;;  %v117_v30 = vrot.slane %v567_v25, 6  ;;  %v141_v34 = vrot.slane %v567_v25, 5 }
   0xd   :  { %119 = vrot.lane.b32.xlu1 %v113_v10, %s488_s20  ;;  %95 = vrot.lane.b32.xlu0 %v89_v11, %s489_s0  ;;  %v91_v14 = vrot.slane %v540_v12, 7  ;;  %v115_v16 = vrot.slane %v540_v12, 6  ;;  %v139_v23 = vrot.slane %v540_v12, 5 }
   0xe   :  { %v90_v17 = vrot.slane %v547_v15, 7  ;;  %v138_v19 = vrot.slane %v547_v15, 5  ;;  %v114_v20 = vrot.slane %v547_v15, 6  ;;  %v559_v21 = vcombine.high %v547_v15, %v547_v15 }
  0x10   :  { %v92_v24 = vrot.slane %v559_v21, 7  ;;  %v116_v27 = vrot.slane %v559_v21, 6  ;;  %v140_v29 = vrot.slane %v559_v21, 5 }
  0x11   :  { %143 = vrot.lane.b32.xlu0 %v137_v13, %s490_s21  ;;  %99 = vrot.lane.b32.xlu1 %v91_v14, %s489_s0 }
  0x15   :  { %123 = vrot.lane.b32.xlu1 %v115_v16, %s488_s20  ;;  %97 = vrot.lane.b32.xlu0 %v90_v17, %s489_s0 }
  0x19   :  { %145 = vrot.lane.b32.xlu1 %v138_v19, %s490_s21  ;;  %121 = vrot.lane.b32.xlu0 %v114_v20, %s488_s20 }
  0x1d   :  { %147 = vrot.lane.b32.xlu0 %v139_v23, %s490_s21  ;;  %101 = vrot.lane.b32.xlu1 %v92_v24, %s489_s0 }
  0x21   :  { %125 = vrot.lane.b32.xlu1 %v116_v27, %s488_s20  ;;  %103 = vrot.lane.b32.xlu0 %v93_v28, %s489_s0  ;;  %v391_v28 = vsub.s32 0, %v524_v3 }
  0x25   :  { %149 = vrot.lane.b32.xlu1 %v140_v29, %s490_s21  ;;  %127 = vrot.lane.b32.xlu0 %v117_v30, %s488_s20  ;;  %v395_v29 = vsub.s32 1, %v524_v3 }
  0x29   :  { %105 = vrot.lane.b32.xlu1 %v94_v33, %s489_s0  ;;  %151 = vrot.lane.b32.xlu0 %v141_v34, %s490_s21 }
  0x2d   :  { %153 = vrot.lane.b32.xlu1 %v142_v35, %s490_s21  ;;  %129 = vrot.lane.b32.xlu0 %v118_v36, %s488_s20 }
  0x7f   :  { %v120_v37 = vpop.permute.xlu1 %119  ;;  %v96_v38 = vpop.permute.xlu0 %95 }
  0x83   :  { %v144_v39 = vpop.permute.xlu0 %143  ;;  %v100_v40 = vpop.permute.xlu1 %99 }
  0x87   :  { %v124_v41 = vpop.permute.xlu1 %123  ;;  %v98_v42 = vpop.permute.xlu0 %97 }
  0x88   :  { %v108_v43 = vsel %vm107_vm1, %v96_v38, %v98_v42  ;;  %v109_v46 = vsel %vm107_vm1, %v98_v42, %v100_v40 }
  0x89   :  { %v164_v47 = vsel %vm161_vm2, %v534_v8, %v108_v43  ;;  %v167_v52 = vsel %vm161_vm2, %v547_v15, %v109_v46 }
  0x8b   :  { %v146_v44 = vpop.permute.xlu1 %145  ;;  %v122_v45 = vpop.permute.xlu0 %121 }
  0x8c   :  { %v156_v48 = vsel %vm155_vm3, %v144_v39, %v146_v44  ;;  %v132_v49 = vsel %vm131_vm4, %v120_v37, %v122_v45  ;;  %v133_v50 = vsel %vm131_vm4, %v122_v45, %v124_v41  ;;  %v399_v45 = vsub.s32 2, %v524_v3 }
  0x8d   :  { %v179_v51 = vsel %vm177_vm5, %v164_v47, %v132_v49  ;;  %v181_v57 = vsel %vm177_vm5, %v167_v52, %v133_v50  ;;  %v403_v47 = vsub.s32 3, %v524_v3 }
  0x8e   :  { %v190_v55 = vsel %vm188_vm6, %v179_v51, %v156_v48  ;;  %v407_v51 = vsub.s32 4, %v524_v3 }
  0x8f   :  { %v148_v53 = vpop.permute.xlu0 %147  ;;  %v102_v54 = vpop.permute.xlu1 %101  ;;  %v205_v59 = vsel %vm204_vm7, %v190_v55, 0 }
  0x90   :  { %v157_v56 = vsel %vm155_vm3, %v146_v44, %v148_v53  ;;  %v110_v63 = vsel %vm107_vm1, %v100_v40, %v102_v54 }
  0x91   :  { %v192_v58 = vsel %vm188_vm6, %v181_v57, %v157_v56  ;;  %v170_v7 = vsel %vm161_vm2, %v540_v12, %v110_v63 }
  0x92   :  { %464 = vmatprep.subr.msk.bf16.mxu0 %vm204_vm7, %v192_v58 }
  0x93   :  { %216 = vmatpush1.bf16.msra.mxu0 %v205_v59  ;;  %v126_v60 = vpop.permute.xlu1 %125  ;;  %v104_v61 = vpop.permute.xlu0 %103 }
  0x94   :  { %473 = vmatprep.subr.bf16.mxu0 %v492_v32  ;;  %v134_v0 = vsel %vm131_vm4, %v124_v41, %v126_v60  ;;  %v111_v4 = vsel %vm107_vm1, %v102_v54, %v104_v61 }
  0x95   :  { %v183_v9 = vsel %vm177_vm5, %v170_v7, %v134_v0  ;;  %v173_v10 = vsel %vm161_vm2, %v559_v21, %v111_v4 }
  0x96   :  { %465 = vmatmul.mubr.msk.bf16.vlgmr.msra.gmra.mrb[0].mxu0 %vm200_vm8, %v199_v62 }
  0x97   :  { %v150_v1 = vpop.permute.xlu1 %149  ;;  %v128_v2 = vpop.permute.xlu0 %127  ;;  %475 = vmatprep.mubr.msk.bf16.mxu0 %vm493_vm9, %v492_v32 }
  0x98   :  { %v158_v5 = vsel %vm155_vm3, %v148_v53, %v150_v1  ;;  %v135_v8 = vsel %vm131_vm4, %v126_v60, %v128_v2 }
  0x99   :  { %v194_v14 = vsel %vm188_vm6, %v183_v9, %v158_v5  ;;  %v185_v16 = vsel %vm177_vm5, %v173_v10, %v135_v8 }
  0x9a   :  { %v209_v12 = vsel %vm204_vm7, %v194_v14, 0 }
  0x9b   :  { %v106_v11 = vpop.permute.xlu1 %105  ;;  %v152_v13 = vpop.permute.xlu0 %151 }
  0x9c   :  { %v159_v15 = vsel %vm155_vm3, %v150_v1, %v152_v13  ;;  %v112_v17 = vsel %vm107_vm1, %v104_v61, %v106_v11 }
  0x9d   :  { %v196_v18 = vsel %vm188_vm6, %v185_v16, %v159_v15  ;;  %v176_v21 = vsel %vm161_vm2, %v567_v25, %v112_v17  ;;  %v45_v25 = vld [vmem:[%s674_s3] sm:$0x1f] }
  0x9e   :  { %466 = vmatprep.subr.msk.bf16.mxu1 %vm204_vm7, %v196_v18  ;;  %v392_v30 = vrot.slane %v45_v25, %v391_v28  ;;  %v396_v31 = vrot.slane %v45_v25, %v395_v29  ;;  %v400_v49 = vrot.slane %v45_v25, %v399_v45  ;;  %v404_v50 = vrot.slane %v45_v25, %v403_v47 }
  0x9f   :  { %v154_v19 = vpop.permute.xlu1 %153  ;;  %257 = vmatpush1.bf16.msra.mxu1 %v209_v12  ;;  %v130_v20 = vpop.permute.xlu0 %129  ;;  %v408_v58 = vrot.slane %v45_v25, %v407_v51 }
  0xa0   :  { %v160_v22 = vsel %vm155_vm3, %v152_v13, %v154_v19  ;;  %v136_v23 = vsel %vm131_vm4, %v128_v2, %v130_v20 }
  0xa1   :  { %v187_v24 = vsel %vm177_vm5, %v176_v21, %v136_v23 }
  0xa2   :  { %467 = vmatmul.mubr.msk.bf16.vlgmr.msra.gmra.mrb[0].mxu1 %vm200_vm8, %v199_v62  ;;  %v198_v26 = vsel %vm188_vm6, %v187_v24, %v160_v22 }
  0xa3   :  { %v213_v27 = vsel %vm204_vm7, %v198_v26, 0  ;;  %v448_v26 = vld [vmem:[%s672_s5] sm:$0x3] }
  0xa4   :  { %474 = vmatpush3.bf16.msra.mxu0 %v213_v27 }
  0xa7   :  { %476 = vmatmul.mubr.msk.bf16.vlgmr.msra.gmra.mrb[4].mxu0 %vm200_vm8, %v199_v62 }
 0x169   :  { %v249_v32 = vpop.f32.mrb[0].mxu0 }
 0x16a   :  { %v414_v33 = vmul.f32 %v392_v30, %v249_v32  ;;  %v251_v34 = vpop.f32.mrb[1].mxu0 }
 0x16b   :  { %v469_v35 = vpack.c.bf16 %v251_v34, %v249_v32  ;;  %v415_v36 = vmul.f32 %v396_v31, %v251_v34  ;;  %v253_v37 = vpop.f32.mrb[2].mxu0 }
 0x16c   :  { %v419_v38 = vsel %vm177_vm5, %v414_v33, 0.0  ;;  %v430_v39 = vmul.f32 %v414_v33, %v249_v32  ;;  %v254_v40 = vpop.f32.mrb[3].mxu0 }
 0x16d   :  { %v420_v41 = vsel %vm177_vm5, %v415_v36, 0.0  ;;  %v431_v42 = vmul.f32 %v415_v36, %v251_v34  ;;  %v355_v59 = vrot.slane %v469_v35, %v530_v6 }
 0x16e   :  { %v435_v43 = vsel %vm177_vm5, %v430_v39, 0.0  ;;  %v421_v44 = vadd.f32 %v420_v41, %v419_v38 }
 0x16f   :  { %v436_v46 = vsel %vm177_vm5, %v431_v42, 0.0 }
 0x170   :  { %v437_v48 = vadd.f32 %v436_v46, %v435_v43 }
 0x175   :  { %v290_v52 = vpop.f32.mrb[0].mxu1 }
 0x176   :  { %v416_v53 = vmul.f32 %v400_v49, %v290_v52  ;;  %v292_v54 = vpop.f32.mrb[1].mxu1 }
 0x177   :  { %v470_v55 = vpack.c.bf16 %v292_v54, %v290_v52  ;;  %v417_v56 = vmul.f32 %v404_v50, %v292_v54  ;;  %v294_v57 = vpop.f32.mrb[2].mxu1 }
 0x178   :  { %v422_v60 = vsel %vm177_vm5, %v416_v53, 0.0  ;;  %v432_v61 = vmul.f32 %v416_v53, %v290_v52  ;;  %v295_v62 = vpop.f32.mrb[3].mxu1 }
 0x179   :  { %v362_v63 = vrot.slane %v470_v55, %v530_v6  ;;  %v433_v0 = vmul.f32 %v417_v56, %v292_v54  ;;  %v423_v1 = vadd.f32 %v422_v60, %v421_v44  ;;  %v424_v2 = vsel %vm177_vm5, %v417_v56, 0.0 }
 0x17a   :  { %v438_v3 = vsel %vm177_vm5, %v432_v61, 0.0  ;;  %v331_v4 = vpop.f32.mrb[4].mxu0 }
 0x17b   :  { %v370_v5 = vcombine.low %v355_v59, %v362_v63  ;;  %v341_v7 = vpack.c.bf16 %v331_v4, %v331_v4  ;;  %v418_v8 = vmul.f32 %v408_v58, %v331_v4  ;;  %v477_v9 = vpop.f32.mrb[5].mxu0  ;;  %v439_v10 = vadd.f32 %v438_v3, %v437_v48 }
 0x17c   :  { %v334_v11 = vpop.f32.mrb[6].mxu0  ;;  %v440_v13 = vsel %vm177_vm5, %v433_v0, 0.0  ;;  %v425_v14 = vadd.f32 %v424_v2, %v423_v1 }
 0x17d   :  { %v369_v15 = vrot.slane %v341_v7, %v530_v6  ;;  %v434_v16 = vmul.f32 %v418_v8, %v331_v4  ;;  %v478_v17 = vpop.f32.mrb[7].mxu0  ;;  %v441_v18 = vadd.f32 %v440_v13, %v439_v10  ;;  %v426_v12 = vsel %vm177_vm5, %v418_v8, 0.0 }
 0x17e   :  { %v377_v19 = vrot.slane %v370_v5, %v530_v6  ;;  %v427_v22 = vadd.f32 %v426_v12, %v425_v14 }
 0x17f   :  { %v384_v20 = vrot.slane %v369_v15, %v530_v6  ;;  %v442_v21 = vsel %vm177_vm5, %v434_v16, 0.0 }
 0x180   :  { %v443_v23 = vadd.f32 %v442_v21, %v441_v18  ;;  %428 = vadd.xlane.f32.xlu0 %v427_v22 }
 0x181   :  { %v385_v24 = vcombine.low %v377_v19, %v384_v20 }
 0x182   :  { %444 = vadd.xlane.f32.xlu1 %v443_v23 }
 0x183   :  { %387 = vst [vmem:[%s675_s4] sm:$0x1f] %v385_v24 }
 0x20d   :  { %v429_v28 = vpop.xlane.xlu0 %428 }
 0x20f   :  { %v445_v27 = vpop.xlane.xlu1 %444 }
 0x210   :  { %v447_v25 = vsel %vm446_vm10, %v429_v28, %v445_v27 }
 0x211   :  { %v449_v6 = vadd.f32 %v448_v26, %v447_v25 }
 0x213   :  { %451 = vst.msk [vmem:[%s672_s5] sm:$0x3] %vm43_vm0, %v449_v6 }

// kernel: expanding_block_forward.6
= control target key start
LH: loop header
LB: loop body
LE: loop exit
PB: predicated region body
PF: predicated region fallthrough
CT: control target
= control target key end

     0   :  { %s1649_s27 = smov 0   ;;  %s2257_s0 = inlined_call_operand.vmem [shape: bf16[2,1920], index: 0, kind: input, shape index: {}, may-alias: {0,1}]   ;;  %s2258_s1 = inlined_call_operand.vmem [shape: bf16[2,1920], index: 1, kind: input, shape index: {}, may-alias: {0,1}]   ;;  %s2259_s2 = inlined_call_operand.vmem [shape: bf16[2,1920], index: 2, kind: input, shape index: {}, may-alias: {2,3}]   ;;  %s2260_s3 = inlined_call_operand.vmem [shape: bf16[2,1920], index: 3, kind: input, shape index: {}, may-alias: {2,3}]   ;;  %s2261_s4 = inlined_call_operand.vmem [shape: bf16[2,18], index: 4, kind: input, shape index: {}]   ;;  %s2262_s5 = inlined_call_operand.vmem [shape: bf16[2,18], index: 5, kind: input, shape index: {}]   ;;  %s2263_s6 = inlined_call_operand.vmem [shape: f32[1,1280], index: 6, kind: input, shape index: {}]   ;;  %s2264_s7 = inlined_call_operand.vmem [shape: bf16[2,1280], index: 7, kind: output, shape index: {0}]   ;;  %s2265_s8 = inlined_call_operand.vmem [shape: f32[2,2], index: 8, kind: output, shape index: {1}]  }
   0x1 LB: > { %s1508_s28 = sadd.s32 4294967295, %s1589_s27   ;;  %p1512_p0 = scmp.ge.s32.totalorder %s1589_s27, 1  ;;  %s1589_s27 = sphi %s1649_s27, %s19_s27  }
   0x2   : > { %p312_p1 = scmp.lt.s32.totalorder %s1589_s27, 3 }
   0x4   : > { %p313_p2 = pnand %p1512_p0, %p312_p1 }
   0x5   : > { %s362_s29 = smul.u32 (!%p313_p2), 5, %s1508_s28  ;;  %s367_s30 = sadd.s32 (!%p313_p2), 1, %s1508_s28 }
   0x6   : > { %316 = sbr.rel (%p313_p2) target bundleno = 717 (0x2cd), region = 48  ;;  %p1513_p6 = scmp.ne.s32.totalorder (!%p313_p2), %s1508_s28, 0 }
   0x7   : > { %s368_s9 = smul.u32 (!%p313_p2), 5, %s367_s30  ;;  %p363_p3 = scmp.lt.s32.totalorder (!%p313_p2), %s362_s29, 14 }
   0x8   : > { %p387_p5 = scmp.lt.s32.totalorder (!%p313_p2), %s362_s29, 9 }
   0x9   : > { %p369_p4 = scmp.lt.s32.totalorder (!%p313_p2), %s368_s9, 14 }
   0xd   : > { %s1657_s10 = scalar_select %p363_p3, %s362_s29, 14 }
   0xe   : > { %s2269_s9 = smov (!%p369_p4, %s368_s9), 14  ;;  %s2271_s29 = smov (!%p387_p5, %s362_s29), 9 }
   0xf   : > { %s365_s13 = scalar_lea.vmem %s2257_s0, %s1657_s10  ;;  %s377_s16 = scalar_lea.vmem %s2259_s2, %s1657_s10  ;;  %vm401_vm0 = vcmask (!%p1513_p6), 9216   ;;  %v1591_v0 = vmov (!%p1513_p6), 0.0  }
  0x10   : > { %s371_s19 = scalar_lea.vmem %s2258_s1, %s2269_s9  ;;  %s383_s22 = scalar_lea.vmem %s2260_s3, %s2269_s9  ;;  %402 = vst.msk [vmem:[%s2265_s8] sm:$0x3] (!%p1513_p6), %vm401_vm0, %v1591_v0 }
  0x11   : > { %s389_s25 = scalar_lea.vmem %s2263_s6, %s2271_s29  ;;  %s394_s11 = scalar_lea.vmem %s2264_s7, %s2271_s29 }
  0x12   : > { %400 = sbr.rel (%p1513_p6) target bundleno = 25 (0x19), region = 52 }
  0x19 PF: > { %v411_v1 = vlaneseq  ;;  %v1592_v2 = vmov 1966171168   ;;  %v720_v6 = vld [vmem:[%s377_s16] sm:$0x1f]  ;;  %s1593_s28 = smov 127   ;;  %s1594_s15 = smov 126  }
  0x1a   : > { %v409_v3 = vunpack.c.l.s4 %v1592_v2  ;;  %s1595_s16 = smov 111   ;;  %s1596_s17 = smov 110   ;;  %v723_v30 = vcombine.high %v720_v6, %v720_v6  ;;  %v1756_v36 = vld [vmem:[%s383_s22] sm:$0x1]  ;;  %v1601_v55 = vmov 0   ;;  %v1602_v59 = vmov 0.0  }
  0x1b   : > { %v1690_v4 = vshrl.u32 %v411_v1, 7  ;;  %s1597_s18 = smov 109   ;;  %s1598_s20 = smov 94   ;;  %v768_v39 = vrot.slane %v1756_v36, 7  ;;  %v791_v44 = vrot.slane %v1756_v36, 6  ;;  %v814_v45 = vrot.slane %v1756_v36, 5  ;;  %1074 = vmatprep.mubr.bf16.mxu1 %v1601_v55  ;;  %1534 = vmatprep.subr.bf16.mxu0 %v1602_v59 }
  0x1c   : > { %v410_v5 = vunpack.c.0.s8 %v409_v3  ;;  %s1599_s21 = smov 93   ;;  %v837_v48 = vrot.slane %v1756_v36, 4  ;;  %s1600_s22 = smov 92   ;;  %v404_v50 = vld [vmem:[%s365_s13] sm:$0x1f]  ;;  %v860_v54 = vrot.slane %v1756_v36, 3 }
  0x1d   : > { %v883_v56 = vrot.slane %v1756_v36, 2  ;;  %v906_v1 = vrot.slane %v1756_v36, 1  ;;  %vm2266_vm1 = vmmov 0   ;;  %vm465_vm2 = vcmask 1039360  }
  0x1e   : > { %v1693_v7 = vsub.s32 %v410_v5, %v1690_v4  ;;  %1538 = vmatprep.mubr.msk.bf16.mxu0 %vm2266_vm1, %v1602_v59  ;;  %vm633_vm3 = vcmask 1040384   ;;  %vm489_vm4 = vcmask 1031168   ;;  %vm649_vm5 = vcmask 1041408  }
  0x1f   : > { %vm513_vm6 = vcmask 908288   ;;  %vm660_vm7 = vcmask 1042432   ;;  %vm537_vm8 = vcmask 900096   ;;  %vm671_vm9 = vcmask 1043456  }
  0x20   : > { %v730_v8 = vrot.slane %v720_v6, %v1693_v7  ;;  %v737_v34 = vrot.slane %v723_v30, %v1693_v7  ;;  %v414_v53 = vrot.slane %v404_v50, %v1693_v7  ;;  %vm561_vm10 = vcmask 891904  }
  0x21   : > { %vm682_vm11 = vcmask 1044480   ;;  %vm585_vm12 = vcmask 769024   ;;  %vm609_vm13 = vcmask 760832   ;;  %vm704_vm14 = vcmask 1046528  }
  0x22   : > { %v1697_v9 = vrot.slane %v730_v8, %v1693_v7  ;;  %v738_v10 = vcombine.high %v730_v8, %v730_v8  ;;  %v1761_v38 = vrot.slane %v737_v34, %v1693_v7  ;;  %v422_v57 = vcombine.high %v414_v53, %v414_v53 }
  0x23   : > { %v1819_v63 = vrot.slane %v414_v53, %v1693_v7  ;;  %vm693_vm15 = vcmask 1045504   ;;  %vm627_vm0 = vcmask 752640   ;;  %vm1023_vm1 = vcmask 146432  }
  0x24   : > { %v763_v11 = vrot.slane %v1697_v9, 7  ;;  %v1701_v12 = vrot.slane %v738_v10, %v1693_v7  ;;  %v1705_v13 = vcombine.high %v1697_v9, %v1697_v9  ;;  %v786_v15 = vrot.slane %v1697_v9, 6 }
  0x25   : > { %v809_v22 = vrot.slane %v1697_v9, 5  ;;  %v832_v23 = vrot.slane %v1697_v9, 4  ;;  %v855_v27 = vrot.slane %v1697_v9, 3  ;;  %v878_v28 = vrot.slane %v1697_v9, 2 }
  0x26   : > { %769 = vrot.lane.b32.xlu1 %v763_v11, %s1593_s28  ;;  %v764_v14 = vrot.slane %v1701_v12, 7  ;;  %v765_v16 = vrot.slane %v1705_v13, 7  ;;  %v787_v17 = vrot.slane %v1701_v12, 6  ;;  %v788_v18 = vrot.slane %v1705_v13, 6 }
  0x27   : > { %v811_v19 = vrot.slane %v1705_v13, 5  ;;  %v810_v20 = vrot.slane %v1701_v12, 5  ;;  %v833_v21 = vrot.slane %v1701_v12, 4  ;;  %v857_v24 = vrot.slane %v1705_v13, 3 }
  0x28   : > { %771 = vrot.lane.b32.xlu0 %v764_v14, %s1593_s28  ;;  %v856_v25 = vrot.slane %v1701_v12, 3  ;;  %v879_v26 = vrot.slane %v1701_v12, 2  ;;  %v880_v29 = vrot.slane %v1705_v13, 2  ;;  %v903_v31 = vrot.slane %v1705_v13, 1 }
  0x29   : > { %v1744_v32 = vcombine.high %v1701_v12, %v1701_v12  ;;  %v902_v33 = vrot.slane %v1701_v12, 1  ;;  %v901_v37 = vrot.slane %v1697_v9, 1  ;;  %v767_v40 = vrot.slane %v1761_v38, 7 }
  0x2a   : > { %792 = vrot.lane.b32.xlu1 %v786_v15, %s1594_s15  ;;  %v790_v41 = vrot.slane %v1761_v38, 6  ;;  %v813_v46 = vrot.slane %v1761_v38, 5  ;;  %v836_v47 = vrot.slane %v1761_v38, 4  ;;  %v859_v49 = vrot.slane %v1761_v38, 3 }
  0x2b   : > { %v766_v35 = vrot.slane %v1744_v32, 7  ;;  %v789_v42 = vrot.slane %v1744_v32, 6  ;;  %v812_v43 = vrot.slane %v1744_v32, 5  ;;  %v858_v51 = vrot.slane %v1744_v32, 3 }
  0x2c   : > { %773 = vrot.lane.b32.xlu0 %v765_v16, %s1593_s28  ;;  %v881_v52 = vrot.slane %v1744_v32, 2  ;;  %v882_v58 = vrot.slane %v1761_v38, 2  ;;  %v905_v60 = vrot.slane %v1761_v38, 1  ;;  %v1814_v61 = vrot.slane %v422_v57, %v1693_v7 }
  0x2d   : > { %v904_v62 = vrot.slane %v1744_v32, 1  ;;  %v1827_v2 = vcombine.high %v1819_v63, %v1819_v63  ;;  %v447_v3 = vrot.slane %v1819_v63, 7  ;;  %v471_v11 = vrot.slane %v1819_v63, 6 }
  0x2e   : > { %794 = vrot.lane.b32.xlu1 %v787_v17, %s1594_s15  ;;  %v448_v0 = vrot.slane %v1814_v61, 7  ;;  %v472_v8 = vrot.slane %v1814_v61, 6  ;;  %v496_v10 = vrot.slane %v1814_v61, 5  ;;  %v495_v14 = vrot.slane %v1819_v63, 5 }
  0x2f   : > { %v449_v5 = vrot.slane %v1827_v2, 7  ;;  %v473_v6 = vrot.slane %v1827_v2, 6  ;;  %v497_v15 = vrot.slane %v1827_v2, 5  ;;  %v520_v16 = vrot.slane %v1814_v61, 4 }
  0x30   : > { %796 = vrot.lane.b32.xlu0 %v788_v18, %s1594_s15  ;;  %v407_v17 = vcombine.high %v404_v50, %v404_v50  ;;  %v544_v18 = vrot.slane %v1814_v61, 3 }
  0x32   : > { %819 = vrot.lane.b32.xlu1 %v811_v19, %s1595_s16  ;;  %v421_v19 = vrot.slane %v407_v17, %v1693_v7 }
  0x34   : > { %817 = vrot.lane.b32.xlu0 %v810_v20, %s1595_s16 }
  0x36   : > { %840 = vrot.lane.b32.xlu1 %v833_v21, %s1596_s17  ;;  %v519_v21 = vrot.slane %v1819_v63, 4 }
  0x38   : > { %815 = vrot.lane.b32.xlu0 %v809_v22, %s1595_s16 }
  0x3a   : > { %838 = vrot.lane.b32.xlu1 %v832_v23, %s1596_s17  ;;  %v1860_v23 = vrot.slane %v421_v19, %v1693_v7 }
  0x3c   : > { %842 = vrot.lane.b32.xlu0 %v1705_v13, %s1596_s17  ;;  %v499_v50 = vrot.slane %v1860_v23, 5 }
  0x3e   : > { %865 = vrot.lane.b32.xlu1 %v857_v24, %s1597_s18 }
  0x40   : > { %863 = vrot.lane.b32.xlu0 %v856_v25, %s1597_s18  ;;  %v545_v25 = vrot.slane %v1827_v2, 3 }
  0x42   : > { %886 = vrot.lane.b32.xlu1 %v879_v26, %s1598_s20  ;;  %v1866_v26 = vcombine.high %v1814_v61, %v1814_v61 }
  0x44   : > { %861 = vrot.lane.b32.xlu0 %v855_v27, %s1597_s18  ;;  %v450_v30 = vrot.slane %v1866_v26, 7 }
  0x46   : > { %884 = vrot.lane.b32.xlu1 %v878_v28, %s1598_s20  ;;  %v451_v28 = vrot.slane %v1860_v23, 7 }
  0x48   : > { %888 = vrot.lane.b32.xlu0 %v880_v29, %s1598_s20 }
  0x4a   : > { %911 = vrot.lane.b32.xlu1 %v903_v31, %s1599_s21 }
  0x4c   : > { %909 = vrot.lane.b32.xlu0 %v902_v33, %s1599_s21  ;;  %v568_v33 = vrot.slane %v1814_v61, 2 }
  0x4e   : > { %775 = vrot.lane.b32.xlu1 %v766_v35, %s1593_s28  ;;  %v543_v35 = vrot.slane %v1819_v63, 3 }
  0x50   : > { %907 = vrot.lane.b32.xlu0 %v901_v37, %s1599_s21  ;;  %v474_v37 = vrot.slane %v1866_v26, 6 }
  0x52   : > { %779 = vrot.lane.b32.xlu1 %v768_v39, %s1593_s28 }
  0x54   : > { %777 = vrot.lane.b32.xlu0 %v767_v40, %s1593_s28  ;;  %v569_v40 = vrot.slane %v1827_v2, 2 }
  0x56   : > { %800 = vrot.lane.b32.xlu1 %v790_v41, %s1594_s15 }
  0x58   : > { %798 = vrot.lane.b32.xlu0 %v789_v42, %s1594_s15  ;;  %v567_v42 = vrot.slane %v1819_v63, 2 }
  0x5a   : > { %821 = vrot.lane.b32.xlu1 %v812_v43, %s1595_s16 }
  0x5c   : > { %802 = vrot.lane.b32.xlu0 %v791_v44, %s1594_s15  ;;  %v475_v44 = vrot.slane %v1860_v23, 6 }
  0x5e   : > { %825 = vrot.lane.b32.xlu1 %v814_v45, %s1595_s16 }
  0x60   : > { %823 = vrot.lane.b32.xlu0 %v813_v46, %s1595_s16  ;;  %v593_v46 = vrot.slane %v1827_v2, 1 }
  0x62   : > { %846 = vrot.lane.b32.xlu1 %v836_v47, %s1596_s17 }
  0x64   : > { %844 = vrot.lane.b32.xlu0 %v1744_v32, %s1596_s17 }
  0x66   : > { %924 = vrot.lane.b32.xlu1 %v1697_v9, %s1600_s22 }
  0x68   : > { %848 = vrot.lane.b32.xlu0 %v837_v48, %s1596_s17  ;;  %v592_v48 = vrot.slane %v1814_v61, 1 }
  0x6a   : > { %928 = vrot.lane.b32.xlu1 %v1705_v13, %s1600_s22 }
  0x6c   : > { %926 = vrot.lane.b32.xlu0 %v1701_v12, %s1600_s22 }
  0x6e   : > { %869 = vrot.lane.b32.xlu1 %v859_v49, %s1597_s18 }
  0x70   : > { %867 = vrot.lane.b32.xlu0 %v858_v51, %s1597_s18 }
  0x72   : > { %890 = vrot.lane.b32.xlu1 %v881_v52, %s1598_s20  ;;  %v498_v52 = vrot.slane %v1866_v26, 5 }
  0x74   : > { %871 = vrot.lane.b32.xlu0 %v860_v54, %s1597_s18 }
  0x76   : > { %894 = vrot.lane.b32.xlu1 %v883_v56, %s1598_s20 }
  0x78   : > { %892 = vrot.lane.b32.xlu0 %v882_v58, %s1598_s20 }
  0x7a   : > { %915 = vrot.lane.b32.xlu1 %v905_v60, %s1599_s21 }
  0x7c   : > { %913 = vrot.lane.b32.xlu0 %v904_v62, %s1599_s21  ;;  %v591_v62 = vrot.slane %v1819_v63, 1 }
  0x7e   : > { %455 = vrot.lane.b32.xlu1 %v448_v0, %s1593_s28 }
  0x80   : > { %917 = vrot.lane.b32.xlu0 %v906_v1, %s1599_s21 }
  0x82   : > { %453 = vrot.lane.b32.xlu1 %v447_v3, %s1593_s28 }
  0x84   : > { %457 = vrot.lane.b32.xlu0 %v449_v5, %s1593_s28 }
  0x86   : > { %481 = vrot.lane.b32.xlu1 %v473_v6, %s1594_s15 }
  0x88   : > { %479 = vrot.lane.b32.xlu0 %v472_v8, %s1594_s15 }
  0x8a   : > { %503 = vrot.lane.b32.xlu1 %v496_v10, %s1595_s16  ;;  %v546_v10 = vrot.slane %v1866_v26, 3 }
  0x8c   : > { %477 = vrot.lane.b32.xlu0 %v471_v11, %s1594_s15 }
  0x8e   : > { %501 = vrot.lane.b32.xlu1 %v495_v14, %s1595_s16 }
  0x90   : > { %505 = vrot.lane.b32.xlu0 %v497_v15, %s1595_s16  ;;  %v523_v15 = vrot.slane %v1860_v23, 4 }
  0x92   : > { %529 = vrot.lane.b32.xlu1 %v1827_v2, %s1596_s17 }
  0x94   : > { %527 = vrot.lane.b32.xlu0 %v520_v16, %s1596_s17 }
  0x96   : > { %934 = vrot.lane.b32.xlu1 %v1756_v36, %s1600_s22 }
  0x98   : > { %v770_v20 = vpop.permute.xlu1 %769  ;;  %932 = vrot.lane.b32.xlu0 %v1761_v38, %s1600_s22 }
  0x9a   : > { %v772_v22 = vpop.permute.xlu0 %771  ;;  %551 = vrot.lane.b32.xlu1 %v544_v18, %s1597_s18 }
  0x9b   : > { %v781_v54 = vsel %vm465_vm2, %v770_v20, %v772_v22 }
  0x9c   : > { %v793_v24 = vpop.permute.xlu1 %792  ;;  %525 = vrot.lane.b32.xlu0 %v519_v21, %s1596_s17  ;;  %v943_v3 = vsel %vm633_vm3, %v1697_v9, %v781_v54 }
  0x9e   : > { %v1868_v27 = vpop.permute.xlu0 %773  ;;  %930 = vrot.lane.b32.xlu1 %v1744_v32, %s1600_s22 }
  0x9f   : > { %v782_v56 = vsel %vm465_vm2, %v772_v22, %v1868_v27 }
  0xa0   : > { %v795_v29 = vpop.permute.xlu1 %794  ;;  %553 = vrot.lane.b32.xlu0 %v545_v25, %s1597_s18  ;;  %v946_v5 = vsel %vm633_vm3, %v1701_v12, %v782_v56  ;;  %v1938_v12 = vld [vmem:[%s371_s19] sm:$0x1] }
  0xa1   : > { %v804_v57 = vsel %vm489_vm4, %v793_v24, %v795_v29  ;;  %v476_v54 = vrot.slane %v1938_v12, 6 }
  0xa2   : > { %v1875_v31 = vpop.permute.xlu0 %796  ;;  %461 = vrot.lane.b32.xlu1 %v451_v28, %s1593_s28  ;;  %v957_v11 = vsel %vm649_vm5, %v943_v3, %v804_v57  ;;  %v452_v28 = vrot.slane %v1938_v12, 7 }
  0xa3   : > { %v805_v58 = vsel %vm489_vm4, %v795_v29, %v1875_v31 }
  0xa4   : > { %v1879_v34 = vpop.permute.xlu1 %819  ;;  %459 = vrot.lane.b32.xlu0 %v450_v30, %s1593_s28  ;;  %v959_v14 = vsel %vm649_vm5, %v946_v5, %v805_v58  ;;  %v524_v5 = vrot.slane %v1938_v12, 4 }
  0xa6   : > { %v818_v36 = vpop.permute.xlu0 %817  ;;  %575 = vrot.lane.b32.xlu1 %v568_v33, %s1598_s20 }
  0xa7   : > { %v828_v0 = vsel %vm513_vm6, %v818_v36, %v1879_v34 }
  0xa8   : > { %v841_v39 = vpop.permute.xlu1 %840  ;;  %549 = vrot.lane.b32.xlu0 %v543_v35, %s1597_s18  ;;  %v969_v16 = vsel %vm660_vm7, %v959_v14, %v828_v0 }
  0xaa   : > { %v816_v41 = vpop.permute.xlu0 %815  ;;  %483 = vrot.lane.b32.xlu1 %v474_v37, %s1594_s15 }
  0xab   : > { %v827_v1 = vsel %vm513_vm6, %v816_v41, %v818_v36 }
  0xac   : > { %v839_v43 = vpop.permute.xlu1 %838  ;;  %577 = vrot.lane.b32.xlu0 %v569_v40, %s1598_s20  ;;  %v967_v17 = vsel %vm660_vm7, %v957_v11, %v827_v1  ;;  %v547_v40 = vrot.slane %v1860_v23, 3  ;;  %v572_v11 = vrot.slane %v1938_v12, 2 }
  0xad   : > { %v850_v18 = vsel %vm537_vm8, %v839_v43, %v841_v39 }
  0xae   : > { %v1891_v45 = vpop.permute.xlu0 %842  ;;  %573 = vrot.lane.b32.xlu1 %v567_v42, %s1598_s20  ;;  %v977_v29 = vsel %vm671_vm9, %v967_v17, %v850_v18  ;;  %v571_v42 = vrot.slane %v1860_v23, 2  ;;  %v596_v17 = vrot.slane %v1938_v12, 1 }
  0xaf   : > { %v851_v6 = vsel %vm537_vm8, %v841_v39, %v1891_v45 }
  0xb0   : > { %v1895_v47 = vpop.permute.xlu1 %865  ;;  %485 = vrot.lane.b32.xlu0 %v475_v44, %s1594_s15  ;;  %v979_v21 = vsel %vm671_vm9, %v969_v16, %v851_v6 }
  0xb2   : > { %v864_v49 = vpop.permute.xlu0 %863  ;;  %601 = vrot.lane.b32.xlu1 %v593_v46, %s1599_s21 }
  0xb3   : > { %v874_v9 = vsel %vm561_vm10, %v864_v49, %v1895_v47 }
  0xb4   : > { %v887_v51 = vpop.permute.xlu1 %886  ;;  %599 = vrot.lane.b32.xlu0 %v592_v48, %s1599_s21  ;;  %v989_v24 = vsel %vm682_vm11, %v979_v21, %v874_v9  ;;  %v548_v9 = vrot.slane %v1938_v12, 3 }
  0xb6   : > { %v862_v53 = vpop.permute.xlu0 %861  ;;  %509 = vrot.lane.b32.xlu1 %v499_v50, %s1595_s16 }
  0xb7   : > { %v873_v22 = vsel %vm561_vm10, %v862_v53, %v864_v49  ;;  %v570_v49 = vrot.slane %v1866_v26, 2 }
  0xb8   : > { %v885_v60 = vpop.permute.xlu1 %884  ;;  %507 = vrot.lane.b32.xlu0 %v498_v52, %s1595_s16  ;;  %v987_v35 = vsel %vm682_vm11, %v977_v29, %v873_v22 }
  0xb9   : > { %v896_v36 = vsel %vm585_vm12, %v885_v60, %v887_v51 }
  0xba   : > { %v1923_v8 = vpop.permute.xlu0 %888  ;;  %531 = vrot.lane.b32.xlu1 %v1866_v26, %s1596_s17  ;;  %v997_v44 = vsel %vm693_vm15, %v987_v35, %v896_v36 }
  0xbb   : > { %v897_v19 = vsel %vm585_vm12, %v887_v51, %v1923_v8  ;;  %v594_v51 = vrot.slane %v1866_v26, 1 }
  0xbc   : > { %v1945_v20 = vpop.permute.xlu1 %911  ;;  %597 = vrot.lane.b32.xlu0 %v591_v62, %s1599_s21  ;;  %v999_v33 = vsel %vm693_vm15, %v989_v24, %v897_v19 }
  0xbe   : > { %v910_v25 = vpop.permute.xlu0 %909  ;;  %555 = vrot.lane.b32.xlu1 %v546_v10, %s1597_s18 }
  0xbf   : > { %v920_v30 = vsel %vm609_vm13, %v910_v25, %v1945_v20 }
  0xc0   : > { %v1959_v37 = vpop.permute.xlu1 %775  ;;  %533 = vrot.lane.b32.xlu0 %v523_v15, %s1596_s17  ;;  %v1010_v39 = vsel %vm704_vm14, %v999_v33, %v920_v30 }
  0xc1   : > { %1042 = vmatprep.subr.bf16.mxu1 %v1010_v39  ;;  %v783_v52 = vsel %vm465_vm2, %v1868_v27, %v1959_v37  ;;  %v595_v27 = vrot.slane %v1860_v23, 1 }
  0xc2   : > { %v908_v41 = vpop.permute.xlu0 %907  ;;  %463 = vrot.lane.b32.xlu1 %v452_v28, %s1593_s28  ;;  %v949_v57 = vsel %vm633_vm3, %v1705_v13, %v783_v52 }
  0xc3   : > { %v919_v43 = vsel %vm609_vm13, %v908_v41, %v910_v25  ;;  %v2024_v25 = vld [vmem:[%s2262_s5] sm:$0x1] }
  0xc4   : > { %v1968_v46 = vpop.permute.xlu1 %779  ;;  %557 = vrot.lane.b32.xlu0 %v547_v40, %s1597_s18  ;;  %v1007_v48 = vsel %vm704_vm14, %v997_v44, %v919_v43 }
  0xc5   : > { %1043 = vmatpush1.bf16.msra.mxu1 %v1007_v48 }
  0xc6   : > { %v1973_v50 = vpop.permute.xlu0 %777  ;;  %581 = vrot.lane.b32.xlu1 %v571_v42, %s1598_s20 }
  0xc7   : > { %v784_v30 = vsel %vm465_vm2, %v1959_v37, %v1973_v50  ;;  %v785_v37 = vsel %vm465_vm2, %v1973_v50, %v1968_v46 }
  0xc8   : > { %v1980_v53 = vpop.permute.xlu1 %800  ;;  %579 = vrot.lane.b32.xlu0 %v570_v49, %s1598_s20  ;;  %v952_v40 = vsel %vm633_vm3, %v1744_v32, %v784_v30  ;;  %v955_v52 = vsel %vm633_vm3, %v1761_v38, %v785_v37 }
  0xca   : > { %v799_v56 = vpop.permute.xlu0 %798  ;;  %603 = vrot.lane.b32.xlu1 %v594_v51, %s1599_s21 }
  0xcb   : > { %v806_v58 = vsel %vm489_vm4, %v1875_v31, %v799_v56  ;;  %v807_v35 = vsel %vm489_vm4, %v799_v56, %v1980_v53 }
  0xcc   : > { %v961_v60 = vsel %vm649_vm5, %v949_v57, %v806_v58  ;;  %v822_v62 = vpop.permute.xlu1 %821  ;;  %487 = vrot.lane.b32.xlu0 %v476_v54, %s1594_s15  ;;  %v963_v42 = vsel %vm649_vm5, %v952_v40, %v807_v35 }
  0xcd   : > { %v829_v0 = vsel %vm513_vm6, %v1879_v34, %v822_v62  ;;  %v500_v34 = vrot.slane %v1938_v12, 5 }
  0xce   : > { %v971_v1 = vsel %vm660_vm7, %v961_v60, %v829_v0  ;;  %v803_v3 = vpop.permute.xlu0 %802  ;;  %615 = vrot.lane.b32.xlu1 %v1819_v63, %s1600_s22 }
  0xd0   : > { %v826_v13 = vpop.permute.xlu1 %825  ;;  %605 = vrot.lane.b32.xlu0 %v595_v27, %s1599_s21 }
  0xd2   : > { %v824_v31 = vpop.permute.xlu0 %823  ;;  %619 = vrot.lane.b32.xlu1 %v1827_v2, %s1600_s22 }
  0xd3   : > { %v830_v41 = vsel %vm513_vm6, %v822_v62, %v824_v31  ;;  %v831_v54 = vsel %vm513_vm6, %v824_v31, %v826_v13 }
  0xd4   : > { %v847_v6 = vpop.permute.xlu1 %846  ;;  %617 = vrot.lane.b32.xlu0 %v1814_v61, %s1600_s22  ;;  %v973_v51 = vsel %vm660_vm7, %v963_v42, %v830_v41 }
  0xd6   : > { %v845_v10 = vpop.permute.xlu0 %844  ;;  %535 = vrot.lane.b32.xlu1 %v524_v5, %s1596_s17 }
  0xd7   : > { %v853_v43 = vsel %vm537_vm8, %v845_v10, %v847_v6 }
  0xd8   : > { %v925_v14 = vpop.permute.xlu1 %924  ;;  %511 = vrot.lane.b32.xlu0 %v500_v34, %s1595_s16  ;;  %v983_v56 = vsel %vm671_vm9, %v973_v51, %v853_v43 }
  0xda   : > { %v849_v15 = vpop.permute.xlu0 %848  ;;  %583 = vrot.lane.b32.xlu1 %v572_v11, %s1598_s20 }
  0xdb   : > { %v854_v57 = vsel %vm537_vm8, %v847_v6, %v849_v15 }
  0xdc   : > { %v2009_v16 = vpop.permute.xlu1 %928  ;;  %559 = vrot.lane.b32.xlu0 %v548_v9, %s1597_s18 }
  0xde   : > { %v927_v18 = vpop.permute.xlu0 %926  ;;  %621 = vrot.lane.b32.xlu1 %v1866_v26, %s1600_s22 }
  0xdf   : > { %v936_v19 = vsel %vm627_vm0, %v925_v14, %v927_v18  ;;  %v937_v21 = vsel %vm627_vm0, %v927_v18, %v2009_v16 }
  0xe0   : > { %1514 = vmatprep.subr.msk.bf16.mxu1 %vm633_vm3, %v937_v21  ;;  %v870_v22 = vpop.permute.xlu1 %869  ;;  %607 = vrot.lane.b32.xlu0 %v596_v17, %s1599_s21  ;;  %v1028_v24 = vsel %vm633_vm3, %v936_v19, 0 }
  0xe1   : > { %1045 = vmatpush1.bf16.msra.mxu1 %v1028_v24 }
  0xe2   : > { %v868_v28 = vpop.permute.xlu0 %867  ;;  %625 = vrot.lane.b32.xlu1 %v1938_v12, %s1600_s22  ;;  %v852_v12 = vsel %vm537_vm8, %v1891_v45, %v845_v10 }
  0xe3   : > { %v875_v36 = vsel %vm561_vm10, %v1895_v47, %v868_v28  ;;  %v981_v44 = vsel %vm671_vm9, %v971_v1, %v852_v12  ;;  %v808_v47 = vsel %vm489_vm4, %v1980_v53, %v803_v3  ;;  %v876_v48 = vsel %vm561_vm10, %v868_v28, %v870_v22 }
  0xe4   : > { %v891_v29 = vpop.permute.xlu1 %890  ;;  %623 = vrot.lane.b32.xlu0 %v1860_v23, %s1600_s22  ;;  %1515 = vmatmul.mubr.msk.bf16.vlgmr.msra.gmra.mrb[0].mxu1 %vm1023_vm1, %v2024_v25  ;;  %v991_v32 = vsel %vm682_vm11, %v981_v44, %v875_v36  ;;  %v965_v53 = vsel %vm649_vm5, %v955_v52, %v808_v47  ;;  %v993_v58 = vsel %vm682_vm11, %v983_v56, %v876_v48 }
  0xe5   : > { %1115 = vmatprep.mubr.bf16.mxu1 %v1601_v55  ;;  %v898_v49 = vsel %vm585_vm12, %v1923_v8, %v891_v29  ;;  %v975_v1 = vsel %vm660_vm7, %v965_v53, %v831_v54 }
  0xe6   : > { %v872_v33 = vpop.permute.xlu0 %871  ;;  %v1001_v8 = vsel %vm693_vm15, %v991_v32, %v898_v49  ;;  %v985_v6 = vsel %vm671_vm9, %v975_v1, %v854_v57 }
  0xe7   : > { %v877_v62 = vsel %vm561_vm10, %v870_v22, %v872_v33 }
  0xe8   : > { %v895_v39 = vpop.permute.xlu1 %894  ;;  %v995_v34 = vsel %vm682_vm11, %v985_v6, %v877_v62 }
  0xea   : > { %v893_v45 = vpop.permute.xlu0 %892 }
  0xeb   : > { %v899_v46 = vsel %vm585_vm12, %v891_v29, %v893_v45  ;;  %v900_v3 = vsel %vm585_vm12, %v893_v45, %v895_v39 }
  0xec   : > { %v916_v50 = vpop.permute.xlu1 %915  ;;  %v1003_v0 = vsel %vm693_vm15, %v993_v58, %v899_v46  ;;  %v1005_v11 = vsel %vm693_vm15, %v995_v34, %v900_v3 }
  0xee   : > { %v914_v60 = vpop.permute.xlu0 %913 }
  0xef   : > { %v921_v27 = vsel %vm609_vm13, %v1945_v20, %v914_v60  ;;  %v922_v38 = vsel %vm609_vm13, %v914_v60, %v916_v50 }
  0xf0   : > { %v2074_v13 = vpop.permute.xlu1 %455  ;;  %v1016_v31 = vsel %vm704_vm14, %v1003_v0, %v922_v38  ;;  %v1013_v5 = vsel %vm704_vm14, %v1001_v8, %v921_v27 }
  0xf1   : > { %1083 = vmatprep.subr.bf16.mxu1 %v1016_v31 }
  0xf2   : > { %v918_v20 = vpop.permute.xlu0 %917  ;;  %1084 = vmatpush1.bf16.msra.mxu1 %v1013_v5 }
  0xf3   : > { %v923_v10 = vsel %vm609_vm13, %v916_v50, %v918_v20 }
  0xf4   : > { %v454_v14 = vpop.permute.xlu1 %453  ;;  %v1019_v9 = vsel %vm704_vm14, %v1005_v11, %v923_v10 }
  0xf5   : > { %1535 = vmatpush3.bf16.msra.mxu0 %v1019_v9  ;;  %v466_v27 = vsel %vm465_vm2, %v454_v14, %v2074_v13 }
  0xf6   : > { %v458_v15 = vpop.permute.xlu0 %457  ;;  %1536 = vmatprep.subr.bf16.mxu0 %v1602_v59  ;;  %v636_v5 = vsel %vm633_vm3, %v1819_v63, %v466_v27 }
  0xf7   : > { %v467_v52 = vsel %vm465_vm2, %v2074_v13, %v458_v15 }
  0xf8   : > { %v482_v17 = vpop.permute.xlu1 %481  ;;  %v639_v56 = vsel %vm633_vm3, %v1814_v61, %v467_v52 }
  0xfa   : > { %v480_v18 = vpop.permute.xlu0 %479 }
  0xfc   : > { %v504_v19 = vpop.permute.xlu1 %503 }
  0xfe   : > { %v478_v21 = vpop.permute.xlu0 %477 }
  0xff   : > { %v490_v38 = vsel %vm489_vm4, %v478_v21, %v480_v18 }
 0x100   : > { %v502_v22 = vpop.permute.xlu1 %501  ;;  %v651_v13 = vsel %vm649_vm5, %v636_v5, %v490_v38 }
 0x101   : > { %v514_v20 = vsel %vm513_vm6, %v502_v22, %v504_v19 }
 0x102   : > { %v2084_v24 = vpop.permute.xlu0 %505  ;;  %v662_v9 = vsel %vm660_vm7, %v651_v13, %v514_v20 }
 0x104   : > { %v2086_v28 = vpop.permute.xlu1 %529 }
 0x106   : > { %v528_v29 = vpop.permute.xlu0 %527 }
 0x108   : > { %v935_v30 = vpop.permute.xlu1 %934 }
 0x10a   : > { %v933_v33 = vpop.permute.xlu0 %932 }
 0x10b   : > { %v940_v35 = vsel %vm627_vm0, %v933_v33, %v935_v30 }
 0x10c   : > { %v552_v12 = vpop.permute.xlu1 %551  ;;  %v1040_v36 = vsel %vm633_vm3, %v940_v35, 0 }
 0x10d   : > { %1537 = vmatpush3.bf16.msra.mxu0 %v1040_v36 }
 0x10e   : > { %v526_v39 = vpop.permute.xlu0 %525 }
 0x10f   : > { %v538_v10 = vsel %vm537_vm8, %v526_v39, %v528_v29 }
 0x110   : > { %v931_v40 = vpop.permute.xlu1 %930  ;;  %1539 = vmatmul.mubr.msk.bf16.vlgmr.msra.gmra.mrb[0].mxu0 %vm1023_vm1, %v2024_v25  ;;  %v673_v63 = vsel %vm671_vm9, %v662_v9, %v538_v10 }
 0x111   : > { %v938_v41 = vsel %vm627_vm0, %v2009_v16, %v931_v40  ;;  %v939_v37 = vsel %vm627_vm0, %v931_v40, %v933_v33  ;;  %1214 = vmatprep.mubr.bf16.mxu0 %v1601_v55 }
 0x112   : > { %v1034_v42 = vsel %vm633_vm3, %v938_v41, 0  ;;  %v2097_v43 = vpop.permute.xlu0 %553  ;;  %1516 = vmatprep.subr.msk.bf16.mxu1 %vm633_vm3, %v939_v37 }
 0x113   : > { %1086 = vmatpush1.bf16.msra.mxu1 %v1034_v42  ;;  %v563_v58 = vsel %vm561_vm10, %v552_v12, %v2097_v43 }
 0x114   : > { %v2100_v44 = vpop.permute.xlu1 %461 }
 0x116   : > { %v460_v45 = vpop.permute.xlu0 %459  ;;  %1517 = vmatmul.mubr.msk.bf16.vlgmr.msra.gmra.mrb[4].mxu1 %vm1023_vm1, %v2024_v25  ;;  %v491_v25 = vsel %vm489_vm4, %v480_v18, %v482_v17 }
 0x117   : > { %1255 = vmatprep.mubr.bf16.mxu1 %v1601_v55  ;;  %v468_v47 = vsel %vm465_vm2, %v458_v15, %v460_v45  ;;  %v515_v55 = vsel %vm513_vm6, %v504_v19, %v2084_v24  ;;  %v653_v57 = vsel %vm649_vm5, %v639_v56, %v491_v25  ;;  %v469_v41 = vsel %vm465_vm2, %v460_v45, %v2100_v44 }
 0x118   : > { %v576_v16 = vpop.permute.xlu1 %575  ;;  %v642_v49 = vsel %vm633_vm3, %v1827_v2, %v468_v47  ;;  %v539_v2 = vsel %vm537_vm8, %v528_v29, %v2086_v28  ;;  %v664_v8 = vsel %vm660_vm7, %v653_v57, %v515_v55 }
 0x119   : > { %v675_v61 = vsel %vm671_vm9, %v664_v8, %v539_v2 }
 0x11a   : > { %v550_v48 = vpop.permute.xlu0 %549  ;;  %v686_v0 = vsel %vm682_vm11, %v675_v61, %v563_v58 }
 0x11b   : > { %v562_v14 = vsel %vm561_vm10, %v550_v48, %v552_v12 }
 0x11c   : > { %v484_v32 = vpop.permute.xlu1 %483  ;;  %v684_v18 = vsel %vm682_vm11, %v673_v63, %v562_v14 }
 0x11d   : > { %v492_v51 = vsel %vm489_vm4, %v482_v17, %v484_v32 }
 0x11e   : > { %v655_v46 = vsel %vm649_vm5, %v642_v49, %v492_v51  ;;  %v578_v50 = vpop.permute.xlu0 %577  ;;  %v645_v49 = vsel %vm633_vm3, %v1866_v26, %v469_v41 }
 0x11f   : > { %v587_v60 = vsel %vm585_vm12, %v576_v16, %v578_v50 }
 0x120   : > { %v574_v54 = vpop.permute.xlu1 %573  ;;  %v697_v31 = vsel %vm693_vm15, %v686_v0, %v587_v60 }
 0x121   : > { %v586_v15 = vsel %vm585_vm12, %v574_v54, %v576_v16 }
 0x122   : > { %v2119_v53 = vpop.permute.xlu0 %485  ;;  %v695_v30 = vsel %vm693_vm15, %v684_v18, %v586_v15 }
 0x123   : > { %v493_v37 = vsel %vm489_vm4, %v484_v32, %v2119_v53 }
 0x124   : > { %v602_v62 = vpop.permute.xlu1 %601  ;;  %v657_v32 = vsel %vm649_vm5, %v645_v49, %v493_v37 }
 0x126   : > { %v600_v1 = vpop.permute.xlu0 %599 }
 0x127   : > { %v611_v3 = vsel %vm609_vm13, %v600_v1, %v602_v62 }
 0x128   : > { %v2135_v6 = vpop.permute.xlu1 %509  ;;  %v709_v34 = vsel %vm704_vm14, %v697_v31, %v611_v3 }
 0x129   : > { %1182 = vmatprep.subr.bf16.mxu0 %v709_v34  ;;  %v1021_v34 = vld [vmem:[%s2261_s4] sm:$0x1] }
 0x12a   : > { %v508_v11 = vpop.permute.xlu0 %507 }
 0x12b   : > { %v516_v39 = vsel %vm513_vm6, %v2084_v24, %v508_v11  ;;  %v517_v16 = vsel %vm513_vm6, %v508_v11, %v2135_v6 }
 0x12c   : > { %v532_v17 = vpop.permute.xlu1 %531  ;;  %v666_v47 = vsel %vm660_vm7, %v655_v46, %v516_v39  ;;  %v668_v46 = vsel %vm660_vm7, %v657_v32, %v517_v16  ;;  %v403_v16 = vld [vmem:[%s389_s25] sm:$0x1f] }
 0x12d   : > { %v540_v48 = vsel %vm537_vm8, %v2086_v28, %v532_v17 }
 0x12e   : > { %v598_v21 = vpop.permute.xlu0 %597  ;;  %v677_v54 = vsel %vm671_vm9, %v666_v47, %v540_v48  ;;  %v1362_v47 = vsub.s32 1, %v1690_v4 }
 0x12f   : > { %v610_v19 = vsel %vm609_vm13, %v598_v21, %v600_v1 }
 0x130   : > { %v556_v22 = vpop.permute.xlu1 %555  ;;  %v706_v29 = vsel %vm704_vm14, %v695_v30, %v610_v19 }
 0x131   : > { %1183 = vmatpush1.bf16.msra.mxu0 %v706_v29  ;;  %v564_v24 = vsel %vm561_vm10, %v2097_v43, %v556_v22 }
 0x132   : > { %v534_v33 = vpop.permute.xlu0 %533  ;;  %v688_v26 = vsel %vm682_vm11, %v677_v54, %v564_v24  ;;  %v1363_v24 = vrot.slane %v403_v16, %v1362_v47 }
 0x133   : > { %v541_v45 = vsel %vm537_vm8, %v532_v17, %v534_v33 }
 0x134   : > { %v464_v35 = vpop.permute.xlu1 %463  ;;  %v679_v43 = vsel %vm671_vm9, %v668_v46, %v541_v45 }
 0x135   : > { %v470_v0 = vsel %vm465_vm2, %v2100_v44, %v464_v35  ;;  %vm2267_vm2 = vmmov 0  }
 0x136   : > { %v558_v12 = vpop.permute.xlu0 %557  ;;  %v648_v44 = vsel %vm633_vm3, %v1860_v23, %v470_v0 }
 0x137   : > { %v565_v52 = vsel %vm561_vm10, %v556_v22, %v558_v12 }
 0x138   : > { %v582_v36 = vpop.permute.xlu1 %581  ;;  %v690_v56 = vsel %vm682_vm11, %v679_v43, %v565_v52 }
 0x13a   : > { %v580_v40 = vpop.permute.xlu0 %579 }
 0x13b   : > { %v588_v25 = vsel %vm585_vm12, %v578_v50, %v580_v40  ;;  %v589_v28 = vsel %vm585_vm12, %v580_v40, %v582_v36 }
 0x13c   : > { %v604_v42 = vpop.permute.xlu1 %603  ;;  %v699_v2 = vsel %vm693_vm15, %v688_v26, %v588_v25  ;;  %v701_v8 = vsel %vm693_vm15, %v690_v56, %v589_v28 }
 0x13d   : > { %v612_v57 = vsel %vm609_vm13, %v602_v62, %v604_v42 }
 0x13e   : > { %v488_v51 = vpop.permute.xlu0 %487  ;;  %v712_v61 = vsel %vm704_vm14, %v699_v2, %v612_v57 }
 0x13f   : > { %v494_v3 = vsel %vm489_vm4, %v2119_v53, %v488_v51 }
 0x140   : > { %v616_v55 = vpop.permute.xlu1 %615  ;;  %v659_v20 = vsel %vm649_vm5, %v648_v44, %v494_v3 }
 0x142   : > { %v606_v58 = vpop.permute.xlu0 %605 }
 0x143   : > { %v613_v50 = vsel %vm609_vm13, %v604_v42, %v606_v58  ;;  %v1358_v42 = vsub.s32 0, %v1690_v4 }
 0x144   : > { %v620_v60 = vpop.permute.xlu1 %619  ;;  %v715_v27 = vsel %vm704_vm14, %v701_v8, %v613_v50  ;;  %v1366_v50 = vsub.s32 2, %v1690_v4  ;;  %v1374_v8 = vsub.s32 4, %v1690_v4 }
 0x145   : > { %1223 = vmatprep.subr.bf16.mxu1 %v715_v27  ;;  %v1359_v48 = vrot.slane %v403_v16, %v1358_v42  ;;  %v1370_v27 = vsub.s32 3, %v1690_v4  ;;  %v1415_v42 = vld [vmem:[%s2265_s8] sm:$0x3] }
 0x146   : > { %v618_v38 = vpop.permute.xlu0 %617  ;;  %1224 = vmatpush1.bf16.msra.mxu1 %v712_v61  ;;  %v1367_v61 = vrot.slane %v403_v16, %v1366_v50 }
 0x147   : > { %v628_v1 = vsel %vm627_vm0, %v616_v55, %v618_v38  ;;  %v629_v62 = vsel %vm627_vm0, %v618_v38, %v620_v60  ;;  %v1375_v38 = vrot.slane %v403_v16, %v1374_v8  ;;  %v1371_v0 = vrot.slane %v403_v16, %v1370_v27 }
 0x148   : > { %v1168_v31 = vsel %vm633_vm3, %v628_v1, 0  ;;  %1519 = vmatprep.subr.msk.bf16.mxu0 %vm633_vm3, %v629_v62  ;;  %v536_v5 = vpop.permute.xlu1 %535 }
 0x149   : > { %1185 = vmatpush1.bf16.msra.mxu0 %v1168_v31  ;;  %v542_v14 = vsel %vm537_vm8, %v534_v33, %v536_v5 }
 0x14a   : > { %v512_v13 = vpop.permute.xlu0 %511  ;;  %1542 = vmatprep.subr.bf16.mxu0 %v1602_v59 }
 0x14b   : > { %v518_v53 = vsel %vm513_vm6, %v2135_v6, %v512_v13 }
 0x14c   : > { %v670_v10 = vsel %vm660_vm7, %v659_v20, %v518_v53  ;;  %1520 = vmatmul.mubr.msk.bf16.vlgmr.msra.gmra.mrb[4].mxu0 %vm1023_vm1, %v1021_v34  ;;  %v584_v11 = vpop.permute.xlu1 %583 }
 0x14d   : > { %1546 = vmatprep.mubr.msk.bf16.mxu0 %vm2267_vm2, %v1602_v59  ;;  %v681_v15 = vsel %vm671_vm9, %v670_v10, %v542_v14  ;;  %v590_v6 = vsel %vm585_vm12, %v582_v36, %v584_v11 }
 0x14e   : > { %v560_v9 = vpop.permute.xlu0 %559 }
 0x14f   : > { %v566_v23 = vsel %vm561_vm10, %v558_v12, %v560_v9 }
 0x150   : > { %v692_v17 = vsel %vm682_vm11, %v681_v15, %v566_v23  ;;  %v622_v63 = vpop.permute.xlu1 %621 }
 0x151   : > { %v703_v30 = vsel %vm693_vm15, %v692_v17, %v590_v6  ;;  %v630_v29 = vsel %vm627_vm0, %v620_v60, %v622_v63 }
 0x152   : > { %v608_v18 = vpop.permute.xlu0 %607  ;;  %v1174_v36 = vsel %vm633_vm3, %v630_v29, 0 }
 0x153   : > { %v614_v21 = vsel %vm609_vm13, %v606_v58, %v608_v18 }
 0x154   : > { %v718_v19 = vsel %vm704_vm14, %v703_v30, %v614_v21  ;;  %v626_v22 = vpop.permute.xlu1 %625 }
 0x155   : > { %1543 = vmatpush3.bf16.msra.mxu0 %v718_v19 }
 0x156   : > { %v624_v33 = vpop.permute.xlu0 %623  ;;  %1544 = vmatprep.subr.bf16.mxu0 %v1602_v59 }
 0x157   : > { %v631_v35 = vsel %vm627_vm0, %v622_v63, %v624_v33  ;;  %v632_v12 = vsel %vm627_vm0, %v624_v33, %v626_v22 }
 0x158   : > { %v1180_v39 = vsel %vm633_vm3, %v632_v12, 0  ;;  %1521 = vmatprep.subr.msk.bf16.mxu1 %vm633_vm3, %v631_v35  ;;  %vm1417_vm3 = vcmask 9216  }
 0x159   : > { %1226 = vmatpush1.bf16.msra.mxu1 %v1174_v36  ;;  %1545 = vmatpush3.bf16.msra.mxu0 %v1180_v39 }
 0x15c   : > { %1522 = vmatmul.mubr.msk.bf16.vlgmr.msra.gmra.mrb[4].mxu1 %vm1023_vm1, %v1021_v34  ;;  %1547 = vmatmul.mubr.msk.bf16.vlgmr.msra.gmra.mrb[0].mxu0 %vm1023_vm1, %v1021_v34  ;;  %vm1413_vm1 = vcmask 7168  }
 0x1b7   : > { %v1076_v40 = vpop.f32.mrb[0].mxu1 }
 0x1b8   : > { %v1078_v41 = vpop.f32.mrb[1].mxu1 }
 0x1b9   : > { %v1080_v37 = vpop.f32.mrb[2].mxu1 }
 0x1ba   : > { %v1081_v59 = vpop.f32.mrb[3].mxu1 }
 0x21f   : > { %v1216_v49 = vpop.f32.mrb[4].mxu0 }
 0x220   : > { %v1217_v45 = vadd.f32 %v1216_v49, %v1076_v40  ;;  %v1218_v51 = vpop.f32.mrb[5].mxu0 }
 0x221   : > { %v1219_v32 = vadd.f32 %v1218_v51, %v1078_v41  ;;  %v1220_v52 = vpop.f32.mrb[6].mxu0 }
 0x222   : > { %v1381_v25 = vmul.f32 %v1359_v48, %v1217_v45  ;;  %v1221_v46 = vpop.f32.mrb[7].mxu0 }
 0x223   : > { %v1524_v54 = vpack.c.bf16 %v1219_v32, %v1217_v45  ;;  %v1382_v28 = vmul.f32 %v1363_v24, %v1219_v32 }
 0x224   : > { %v1386_v55 = vsel %vm649_vm5, %v1381_v25, 0.0  ;;  %v1397_v26 = vmul.f32 %v1381_v25, %v1217_v45 }
 0x225   : > { %v1387_v43 = vsel %vm649_vm5, %v1382_v28, 0.0  ;;  %v1398_v56 = vmul.f32 %v1382_v28, %v1219_v32  ;;  %v1322_v11 = vrot.slane %v1524_v54, %v1693_v7 }
 0x226   : > { %v1402_v2 = vsel %vm649_vm5, %v1397_v26, 0.0  ;;  %v1388_v57 = vadd.f32 %v1387_v43, %v1386_v55 }
 0x227   : > { %v1403_v58 = vsel %vm649_vm5, %v1398_v56, 0.0 }
 0x228   : > { %v1404_v60 = vadd.f32 %v1403_v58, %v1402_v2 }
 0x22f   : > { %v1257_v1 = vpop.f32.mrb[4].mxu1  ;;  %v1298_v62 = vpop.f32.mrb[0].mxu0 }
 0x230   : > { %v1383_v3 = vmul.f32 %v1367_v61, %v1257_v1  ;;  %v1308_v31 = vpack.c.bf16 %v1298_v62, %v1298_v62  ;;  %v1385_v5 = vmul.f32 %v1375_v38, %v1298_v62  ;;  %v1259_v34 = vpop.f32.mrb[5].mxu1  ;;  %v1548_v44 = vpop.f32.mrb[1].mxu0 }
 0x231   : > { %v1525_v13 = vpack.c.bf16 %v1259_v34, %v1257_v1  ;;  %v1384_v20 = vmul.f32 %v1371_v0, %v1259_v34  ;;  %v1261_v53 = vpop.f32.mrb[6].mxu1  ;;  %v1301_v10 = vpop.f32.mrb[2].mxu0 }
 0x232   : > { %v1389_v14 = vsel %vm649_vm5, %v1383_v3, 0.0  ;;  %v1399_v9 = vmul.f32 %v1383_v3, %v1257_v1  ;;  %v1336_v4 = vrot.slane %v1308_v31, %v1693_v7  ;;  %v1262_v23 = vpop.f32.mrb[7].mxu1  ;;  %v1549_v15 = vpop.f32.mrb[3].mxu0  ;;  %v1401_v30 = vmul.f32 %v1385_v5, %v1298_v62 }
 0x233   : > { %v1329_v17 = vrot.slane %v1525_v13, %v1693_v7  ;;  %v1400_v63 = vmul.f32 %v1384_v20, %v1259_v34  ;;  %v1390_v6 = vadd.f32 %v1389_v14, %v1388_v57  ;;  %v1391_v18 = vsel %vm649_vm5, %v1384_v20, 0.0 }
 0x234   : > { %v1405_v21 = vsel %vm649_vm5, %v1399_v9, 0.0  ;;  %v1393_v35 = vsel %vm649_vm5, %v1385_v5, 0.0  ;;  %v1351_v12 = vrot.slane %v1336_v4, %v1693_v7  ;;  %v1409_v41 = vsel %vm649_vm5, %v1401_v30, 0.0 }
 0x235   : > { %v1337_v19 = vcombine.low %v1322_v11, %v1329_v17  ;;  %v1392_v22 = vadd.f32 %v1391_v18, %v1390_v6  ;;  %v1406_v29 = vadd.f32 %v1405_v21, %v1404_v60  ;;  %v1407_v33 = vsel %vm649_vm5, %v1400_v63, 0.0 }
 0x237   : > { %v1344_v36 = vrot.slane %v1337_v19, %v1693_v7  ;;  %v1394_v39 = vadd.f32 %v1393_v35, %v1392_v22  ;;  %v1408_v40 = vadd.f32 %v1407_v33, %v1406_v29 }
 0x239   : > { %v1352_v37 = vcombine.low %v1344_v36, %v1351_v12  ;;  %1395 = vadd.xlane.f32.xlu0 %v1394_v39  ;;  %v1410_v59 = vadd.f32 %v1409_v41, %v1408_v40 }
 0x23b   : > { %1354 = vst [vmem:[%s394_s11] sm:$0x1f] %v1352_v37  ;;  %1411 = vadd.xlane.f32.xlu1 %v1410_v59 }
 0x2c6   : > { %v1396_v16 = vpop.xlane.xlu0 %1395 }
 0x2c8   : > { %v1412_v7 = vpop.xlane.xlu1 %1411 }
 0x2c9   : > { %v1414_v47 = vsel %vm1413_vm1, %v1396_v16, %v1412_v7 }
 0x2ca   : > { %v1416_v48 = vadd.f32 %v1415_v42, %v1414_v47 }
 0x2cc   : > { %1418 = vst.msk [vmem:[%s2265_s8] sm:$0x3] %vm1417_vm3, %v1416_v48 }
 0x2cd PF: > { %s19_s27 = sadd.s32 1, %s1589_s27  }
 0x2ce   : > { %p16_p7 = scmp.ge.s32.totalorder %s19_s27, 4  }
 0x2d0   :  { %18 = sbr.rel (!%p16_p7) target bundleno = 1 (0x1), region = 102 }

</bundles_post_ra>
